<compile_context>
chip_gen: v5e
topology: v5e:2x2
jax: 0.10.0
libtpu: 0.0.40
codegen_flags: <defaults>
</compile_context>

<pallas_src>
import jax
import jax.numpy as jnp
from jax.experimental import pallas as pl
from jax.experimental.pallas import tpu as pltpu

D_MODEL = 32
N_HEADS = 4
D_HEAD = D_MODEL // N_HEADS
D_FF = 4 * D_MODEL
LN_EPS = 1e-5
NEG_INF = -1e30

# ---- packed-parameter column offsets (static ints -> zero-cost ref slices) --
# bf16 weight slab: [D_MODEL, W_COLS]
OFF_WQ_S = 0                                # per-head masked+scaled W_q (self)
OFF_WVWO_S = OFF_WQ_S + N_HEADS * D_MODEL   # per-head W_v @ W_o        (self)
OFF_WQ_C = OFF_WVWO_S + N_HEADS * D_MODEL   # per-head masked+scaled W_q (cross)
OFF_WVWO_C = OFF_WQ_C + N_HEADS * D_MODEL   # per-head W_v @ W_o        (cross)
OFF_W1 = OFF_WVWO_C + N_HEADS * D_MODEL     # FFN W1   [D, D_FF]
OFF_W2T = OFF_W1 + D_FF                     # FFN W2^T [D, D_FF]
OFF_WK_S = OFF_W2T + D_FF                   # W_k (self)  [D, D]
OFF_WK_C = OFF_WK_S + D_MODEL               # W_k (cross) [D, D]
W_COLS = OFF_WK_C + D_MODEL                 # 832

# f32 vector slab: [1, VEC_COLS]
OFF_B1 = 0
OFF_G1 = OFF_B1 + D_FF
OFF_BE1 = OFF_G1 + D_MODEL
OFF_G2 = OFF_BE1 + D_MODEL
OFF_BE2 = OFF_G2 + D_MODEL
OFF_G3 = OFF_BE2 + D_MODEL
OFF_BE3 = OFF_G3 + D_MODEL
OFF_B2 = OFF_BE3 + D_MODEL
VEC_COLS_RAW = OFF_B2 + D_MODEL             # 352
VEC_COLS = 384                              # padded to a multiple of 128 lanes


# ------------------------------ fused kernel --------------------------------

def _decoder_layer_kernel(y_ref, x_ref, mask_ref, w_ref, vec_ref, o_ref):
    """One batch element per grid step; everything stays VMEM-resident."""
    D = D_MODEL
    YL = y_ref.shape[0]
    XL = x_ref.shape[0]

    y0 = y_ref[...].astype(jnp.float32)               # (YL, D)
    x0 = x_ref[...].astype(jnp.float32)               # (XL, D)

    def layer_norm(t, g_off, b_off):
        mu = jnp.mean(t, axis=-1, keepdims=True)
        var = jnp.mean(jnp.square(t - mu), axis=-1, keepdims=True)
        return ((t - mu) * jax.lax.rsqrt(var + LN_EPS)
                * vec_ref[:, g_off:g_off + D] + vec_ref[:, b_off:b_off + D])

    def mha(q_in, kv_in, wq_off, wk_off, wvwo_off, bias):
        # q_in:(QL,D), kv_in:(KL,D) f32; bias:(QL,KL) additive (0 / NEG_INF).
        # Per-head structure is folded into the packed weights (pack_params),
        # so there is no value slicing and no head concatenation here.
        q_bf = q_in.astype(jnp.bfloat16)
        kv_bf = kv_in.astype(jnp.bfloat16)
        k_bf = jnp.dot(kv_bf, w_ref[:, wk_off:wk_off + D],
                       preferred_element_type=jnp.float32).astype(jnp.bfloat16)
        out = jnp.zeros((q_in.shape[0], D), jnp.float32)
        for h in range(N_HEADS):
            # scaled, head-column-masked query: only head-h columns nonzero
            q_h = jnp.dot(q_bf, w_ref[:, wq_off + h * D:wq_off + (h + 1) * D],
                          preferred_element_type=jnp.float32)
            # q_h @ k^T  ==  Q_h @ K_h^T / sqrt(d_head)
            s = jax.lax.dot_general(
                q_h.astype(jnp.bfloat16), k_bf,
                dimension_numbers=(((1,), (1,)), ((), ())),
                preferred_element_type=jnp.float32) + bias
            s = s - jnp.max(s, axis=-1, keepdims=True)
            p = jnp.exp(s)
            p = p * pl.reciprocal(jnp.sum(p, axis=-1, keepdims=True), approx=False)
            # kv @ (W_v[:,h] @ W_o[h,:])  ==  V_h @ W_o[h,:]   (full width D)
            vo_bf = jnp.dot(kv_bf,
                            w_ref[:, wvwo_off + h * D:wvwo_off + (h + 1) * D],
                            preferred_element_type=jnp.float32).astype(jnp.bfloat16)
            out = out + jnp.dot(p.astype(jnp.bfloat16), vo_bf,
                                preferred_element_type=jnp.float32)
        return out                                     # == concat(heads) @ W_o

    # -- 1) causal self-attention + residual + LayerNorm ----------------------
    row = jax.lax.broadcasted_iota(jnp.int32, (YL, YL), 0)
    col = jax.lax.broadcasted_iota(jnp.int32, (YL, YL), 1)
    causal_bias = jnp.where(col > row, NEG_INF, 0.0).astype(jnp.float32)
    y1 = layer_norm(y0 + mha(y0, y0, OFF_WQ_S, OFF_WK_S, OFF_WVWO_S, causal_bias),
                    OFF_G1, OFF_BE1)

    # -- 2) cross-attention over encoder memory + residual + LayerNorm --------
    cross_bias = mask_ref[...].astype(jnp.float32) * NEG_INF        # (YL, XL)
    y2 = layer_norm(y1 + mha(y1, x0, OFF_WQ_C, OFF_WK_C, OFF_WVWO_C, cross_bias),
                    OFF_G2, OFF_BE2)

    # -- 3) FFN + residual + LayerNorm ----------------------------------------
    h1 = jnp.maximum(
        jnp.dot(y2.astype(jnp.bfloat16), w_ref[:, OFF_W1:OFF_W1 + D_FF],
                preferred_element_type=jnp.float32)
        + vec_ref[:, OFF_B1:OFF_B1 + D_FF], 0.0)
    ff = jax.lax.dot_general(                                        # h1 @ W2
        h1.astype(jnp.bfloat16), w_ref[:, OFF_W2T:OFF_W2T + D_FF],
        dimension_numbers=(((1,), (1,)), ((), ())),
        preferred_element_type=jnp.float32) + vec_ref[:, OFF_B2:OFF_B2 + D]
    y3 = layer_norm(y2 + ff, OFF_G3, OFF_BE3)

    o_ref[...] = y3.astype(o_ref.dtype)


# ------------------------------ host wrapper ---------------------------------

def decoder_layer_forward(y, x, mask, w_slab, vec_slab):
    """y: [ylen, B, D]; x: [xlen, B, D]; mask: [B, ylen, xlen] (1.0 = masked)."""
    YL, B, D = y.shape
    XL = x.shape[0]

    # tiny layout transposes so the kernel sees batch-major row blocks
    y2d = jnp.transpose(y, (1, 0, 2)).reshape(B * YL, D)
    x2d = jnp.transpose(x, (1, 0, 2)).reshape(B * XL, D)

    out2d = pl.pallas_call(
        _decoder_layer_kernel,
        out_shape=jax.ShapeDtypeStruct((B * YL, D), y.dtype),
        grid=(B,),
        in_specs=[
            pl.BlockSpec((YL, D), lambda b: (b, 0)),            # y rows of batch b
            pl.BlockSpec((XL, D), lambda b: (b, 0)),            # x rows of batch b
            pl.BlockSpec((None, YL, XL), lambda b: (b, 0, 0)),  # mask[b]
            pl.BlockSpec((D, W_COLS), lambda b: (0, 0)),        # packed weights (bf16)
            pl.BlockSpec((1, VEC_COLS), lambda b: (0, 0)),      # packed LN/bias vectors
        ],
        out_specs=pl.BlockSpec((YL, D), lambda b: (b, 0)),
        compiler_params=pltpu.CompilerParams(
            dimension_semantics=("parallel",)),                 # v7x: one batch per core
    )(y2d, x2d, mask.astype(jnp.float32), w_slab, vec_slab)

    return jnp.transpose(out2d.reshape(B, YL, D), (1, 0, 2))


# ------------------------------ parameters -----------------------------------

def init_decoder_layer_params(key):
    ks = jax.random.split(key, 10)

    def lin(k, fan_in, fan_out):
        lim = 1.0 / (fan_in ** 0.5)
        return jax.random.uniform(k, (fan_in, fan_out), jnp.float32, -lim, lim)

    return {
        # self-attention (Linear(dim, dim, bias=False) x4, as in the reference)
        "wq_s": lin(ks[0], D_MODEL, D_MODEL), "wk_s": lin(ks[1], D_MODEL, D_MODEL),
        "wv_s": lin(ks[2], D_MODEL, D_MODEL), "wo_s": lin(ks[3], D_MODEL, D_MODEL),
        # cross-attention
        "wq_c": lin(ks[4], D_MODEL, D_MODEL), "wk_c": lin(ks[5], D_MODEL, D_MODEL),
        "wv_c": lin(ks[6], D_MODEL, D_MODEL), "wo_c": lin(ks[7], D_MODEL, D_MODEL),
        # FFN (Linear with bias)
        "w1": lin(ks[8], D_MODEL, D_FF), "b1": jnp.zeros((1, D_FF), jnp.float32),
        "w2": lin(ks[9], D_FF, D_MODEL), "b2": jnp.zeros((1, D_MODEL), jnp.float32),
        # LayerNorms
        "g1": jnp.ones((1, D_MODEL), jnp.float32), "be1": jnp.zeros((1, D_MODEL), jnp.float32),
        "g2": jnp.ones((1, D_MODEL), jnp.float32), "be2": jnp.zeros((1, D_MODEL), jnp.float32),
        "g3": jnp.ones((1, D_MODEL), jnp.float32), "be3": jnp.zeros((1, D_MODEL), jnp.float32),
    }


def pack_params(p):
    """Fold per-head structure + softmax scale into two lane-dense slabs."""
    scale = 1.0 / (D_HEAD ** 0.5)

    def per_head_q(wq):
        # column block h: W_q with only head-h output columns kept, pre-scaled
        blocks = []
        for h in range(N_HEADS):
            m = jnp.zeros((D_MODEL,), jnp.float32).at[h * D_HEAD:(h + 1) * D_HEAD].set(1.0)
            blocks.append(wq * scale * m[None, :])
        return jnp.concatenate(blocks, axis=1)                   # [D, H*D]

    def per_head_vo(wv, wo):
        # column block h: W_v[:, head h] @ W_o[head h, :]  (output proj folded)
        blocks = [wv[:, h * D_HEAD:(h + 1) * D_HEAD] @ wo[h * D_HEAD:(h + 1) * D_HEAD, :]
                  for h in range(N_HEADS)]
        return jnp.concatenate(blocks, axis=1)                   # [D, H*D]

    w_slab = jnp.concatenate([
        per_head_q(p["wq_s"]), per_head_vo(p["wv_s"], p["wo_s"]),
        per_head_q(p["wq_c"]), per_head_vo(p["wv_c"], p["wo_c"]),
        p["w1"], p["w2"].T, p["wk_s"], p["wk_c"],
    ], axis=1).astype(jnp.bfloat16)                              # [32, 832] bf16

    vec_slab = jnp.concatenate([
        p["b1"], p["g1"], p["be1"], p["g2"], p["be2"], p["g3"], p["be3"], p["b2"],
        jnp.zeros((1, VEC_COLS - VEC_COLS_RAW), jnp.float32),
    ], axis=1).astype(jnp.float32)                               # [1, 384] f32
    return w_slab, vec_slab


# ------------------------------ pure-JAX reference ---------------------------

def decoder_layer_reference(y, x, mask, p):
    """Faithful f32 JAX port of the PyTorch module (for validation)."""
    def mha(q_in, kv_in, wq, wk, wv, wo, bias):
        QL, B, D = q_in.shape
        KL = kv_in.shape[0]
        q = (q_in @ wq).reshape(QL, B, N_HEADS, D_HEAD)
        k = (kv_in @ wk).reshape(KL, B, N_HEADS, D_HEAD)
        v = (kv_in @ wv).reshape(KL, B, N_HEADS, D_HEAD)
        s = jnp.einsum("qbhd,kbhd->bhqk", q, k) / (D_HEAD ** 0.5) + bias[:, None]
        a = jax.nn.softmax(s, axis=-1)
        o = jnp.einsum("bhqk,kbhd->qbhd", a, v).reshape(QL, B, D)
        return o @ wo

    def ln(t, g, b):
        mu = t.mean(-1, keepdims=True)
        var = ((t - mu) ** 2).mean(-1, keepdims=True)
        return (t - mu) * jax.lax.rsqrt(var + LN_EPS) * g + b

    YL, B, _ = y.shape
    causal = jnp.triu(jnp.ones((YL, YL), jnp.float32), 1)        # 1 = masked
    cbias = jnp.broadcast_to(causal[None], (B, YL, YL)) * NEG_INF
    y = ln(y + mha(y, y, p["wq_s"], p["wk_s"], p["wv_s"], p["wo_s"], cbias),
           p["g1"], p["be1"])
    y = ln(y + mha(y, x, p["wq_c"], p["wk_c"], p["wv_c"], p["wo_c"], mask * NEG_INF),
           p["g2"], p["be2"])
    h = jnp.maximum(y @ p["w1"] + p["b1"], 0.0)
    y = ln(y + (h @ p["w2"] + p["b2"]), p["g3"], p["be3"])
    return y


if __name__ == "__main__":
    key = jax.random.PRNGKey(0)
    k_y, k_x, k_p = jax.random.split(key, 3)

    YLEN, XLEN, B = 8, 8, 2
    y = jax.random.normal(k_y, (YLEN, B, D_MODEL), jnp.float32)   # decoder input
    x = jax.random.normal(k_x, (XLEN, B, D_MODEL), jnp.float32)   # encoder memory

    # cross-attention padding mask [B, ylen, xlen]; 1.0 = masked encoder position
    x_pad = jnp.array([[0, 0, 0, 0, 0, 0, 0, 0],
                       [0, 0, 0, 0, 0, 1, 1, 1]], dtype=jnp.float32)
    mask = jnp.broadcast_to(x_pad[:, None, :], (B, YLEN, XLEN))

    params = init_decoder_layer_params(k_p)
    w_slab, vec_slab = pack_params(params)

    fwd = jax.jit(decoder_layer_forward)
    out = fwd(y, x, mask, w_slab, vec_slab)
    jax.block_until_ready(out)
    assert out.shape == (YLEN, B, D_MODEL)

    # sanity check against the pure-JAX f32 reference (kernel uses bf16 MXU
    # operands, hence the loose tolerance)
    ref = decoder_layer_reference(y, x, mask, params)
    assert float(jnp.max(jnp.abs(out - ref))) < 0.15

    print("KERNEL_OK")
</pallas_src>

<mosaic_0001>
module attributes {stable_mosaic.version = 11 : i64} {
  func.func @_decoder_layer_kernel(%arg0: i32, %arg1: memref<8x32xf32, #tpu.memory_space<vmem>>, %arg2: memref<8x32xf32, #tpu.memory_space<vmem>>, %arg3: memref<1x8x8xf32, #tpu.memory_space<vmem>>, %arg4: memref<32x832xbf16, #tpu.memory_space<vmem>>, %arg5: memref<1x384xf32, #tpu.memory_space<vmem>>, %arg6: memref<8x32xf32, #tpu.memory_space<vmem>>) attributes {dimension_semantics = [#tpu.dimension_semantics<parallel>], iteration_bounds = array<i64: 2>, scalar_prefetch = 0 : i64, scratch_operands = 0 : i64, tpu.core_type = #tpu.core_type<tc>, window_params = [{transform_indices = @transform_0, window_bounds = array<i64: 8, 32>}, {transform_indices = @transform_1, window_bounds = array<i64: 8, 32>}, {transform_indices = @transform_2, window_bounds = array<i64: 1, 8, 8>}, {pipeline_mode = #tpu.pipeline_mode<synchronous>, transform_indices = @transform_3, window_bounds = array<i64: 32, 832>}, {pipeline_mode = #tpu.pipeline_mode<synchronous>, transform_indices = @transform_4, window_bounds = array<i64: 1, 384>}, {transform_indices = @transform_5, window_bounds = array<i64: 8, 32>}]} {
    %c0 = arith.constant 0 : index
    %c0_0 = arith.constant 0 : index
    %0 = vector.load %arg1[%c0, %c0_0] : memref<8x32xf32, #tpu.memory_space<vmem>>, vector<8x32xf32>
    %c0_1 = arith.constant 0 : index
    %c0_2 = arith.constant 0 : index
    %1 = vector.load %arg2[%c0_1, %c0_2] : memref<8x32xf32, #tpu.memory_space<vmem>>, vector<8x32xf32>
    %2 = tpu.iota {dimensions = array<i32: 0>} : vector<8x8xi32>
    %3 = tpu.iota {dimensions = array<i32: 1>} : vector<8x8xi32>
    %4 = arith.cmpi sgt, %3, %2 : vector<8x8xi32>
    %cst = arith.constant -1.000000e+30 : f32
    %cst_3 = arith.constant 0.000000e+00 : f32
    %5 = vector.broadcast %cst : f32 to vector<8x8xf32>
    %6 = vector.broadcast %cst_3 : f32 to vector<8x8xf32>
    %7 = arith.select %4, %5, %6 : vector<8x8xi1>, vector<8x8xf32>
    %8 = arith.truncf %0 : vector<8x32xf32> to vector<8x32xbf16>
    %9 = arith.truncf %0 : vector<8x32xf32> to vector<8x32xbf16>
    %c0_4 = arith.constant 0 : index
    %c768 = arith.constant 768 : index
    %10 = vector.load %arg4[%c0_4, %c768] : memref<32x832xbf16, #tpu.memory_space<vmem>>, vector<32x32xbf16>
    %cst_5 = arith.constant dense<0.000000e+00> : vector<8x32xf32>
    %11 = tpu.matmul %9, %10, %cst_5 {dimension_numbers = #tpu.dot_dimension_numbers<[1], [0], [0], [1], [0, 0, 1, 1], [], []>} : vector<8x32xbf16>, vector<32x32xbf16>, vector<8x32xf32> -> vector<8x32xf32>
    %12 = arith.truncf %11 : vector<8x32xf32> to vector<8x32xbf16>
    %cst_6 = arith.constant 0.000000e+00 : f32
    %13 = vector.broadcast %cst_6 : f32 to vector<8x32xf32>
    %c0_7 = arith.constant 0 : index
    %c0_8 = arith.constant 0 : index
    %14 = vector.load %arg4[%c0_7, %c0_8] : memref<32x832xbf16, #tpu.memory_space<vmem>>, vector<32x32xbf16>
    %cst_9 = arith.constant dense<0.000000e+00> : vector<8x32xf32>
    %15 = tpu.matmul %8, %14, %cst_9 {dimension_numbers = #tpu.dot_dimension_numbers<[1], [0], [0], [1], [0, 0, 1, 1], [], []>} : vector<8x32xbf16>, vector<32x32xbf16>, vector<8x32xf32> -> vector<8x32xf32>
    %16 = arith.truncf %15 : vector<8x32xf32> to vector<8x32xbf16>
    %cst_10 = arith.constant dense<0.000000e+00> : vector<8x8xf32>
    %17 = tpu.matmul %16, %12, %cst_10 {dimension_numbers = #tpu.dot_dimension_numbers<[1], [1], [0], [0], [0, 0, 1, 0], [], []>} : vector<8x32xbf16>, vector<8x32xbf16>, vector<8x8xf32> -> vector<8x8xf32>
    %18 = arith.addf %17, %7 : vector<8x8xf32>
    %cst_11 = arith.constant dense<0xFF800000> : vector<8xf32>
    %19 = vector.multi_reduction <maximumf>, %18, %cst_11 [1] : vector<8x8xf32> to vector<8xf32>
    %20 = vector.shape_cast %19 : vector<8xf32> to vector<8x1xf32>
    %21 = vector.broadcast %20 : vector<8x1xf32> to vector<8x8xf32>
    %22 = arith.subf %18, %21 : vector<8x8xf32>
    %23 = math.exp %22 : vector<8x8xf32>
    %cst_12 = arith.constant dense<0.000000e+00> : vector<8xf32>
    %24 = vector.multi_reduction <add>, %23, %cst_12 [1] : vector<8x8xf32> to vector<8xf32>
    %25 = vector.shape_cast %24 : vector<8xf32> to vector<8x1xf32>
    %26 = tpu.reciprocal %25 : vector<8x1xf32> -> vector<8x1xf32>
    %27 = vector.broadcast %26 : vector<8x1xf32> to vector<8x8xf32>
    %28 = arith.mulf %23, %27 : vector<8x8xf32>
    %c0_13 = arith.constant 0 : index
    %c128 = arith.constant 128 : index
    %29 = vector.load %arg4[%c0_13, %c128] : memref<32x832xbf16, #tpu.memory_space<vmem>>, vector<32x32xbf16>
    %cst_14 = arith.constant dense<0.000000e+00> : vector<8x32xf32>
    %30 = tpu.matmul %9, %29, %cst_14 {dimension_numbers = #tpu.dot_dimension_numbers<[1], [0], [0], [1], [0, 0, 1, 1], [], []>} : vector<8x32xbf16>, vector<32x32xbf16>, vector<8x32xf32> -> vector<8x32xf32>
    %31 = arith.truncf %30 : vector<8x32xf32> to vector<8x32xbf16>
    %32 = arith.truncf %28 : vector<8x8xf32> to vector<8x8xbf16>
    %cst_15 = arith.constant dense<0.000000e+00> : vector<8x32xf32>
    %33 = tpu.matmul %32, %31, %cst_15 {dimension_numbers = #tpu.dot_dimension_numbers<[1], [0], [0], [1], [0, 0, 1, 1], [], []>} : vector<8x8xbf16>, vector<8x32xbf16>, vector<8x32xf32> -> vector<8x32xf32>
    %34 = arith.addf %13, %33 : vector<8x32xf32>
    %c0_16 = arith.constant 0 : index
    %c32 = arith.constant 32 : index
    %35 = vector.load %arg4[%c0_16, %c32] : memref<32x832xbf16, #tpu.memory_space<vmem>>, vector<32x32xbf16>
    %cst_17 = arith.constant dense<0.000000e+00> : vector<8x32xf32>
    %36 = tpu.matmul %8, %35, %cst_17 {dimension_numbers = #tpu.dot_dimension_numbers<[1], [0], [0], [1], [0, 0, 1, 1], [], []>} : vector<8x32xbf16>, vector<32x32xbf16>, vector<8x32xf32> -> vector<8x32xf32>
    %37 = arith.truncf %36 : vector<8x32xf32> to vector<8x32xbf16>
    %cst_18 = arith.constant dense<0.000000e+00> : vector<8x8xf32>
    %38 = tpu.matmul %37, %12, %cst_18 {dimension_numbers = #tpu.dot_dimension_numbers<[1], [1], [0], [0], [0, 0, 1, 0], [], []>} : vector<8x32xbf16>, vector<8x32xbf16>, vector<8x8xf32> -> vector<8x8xf32>
    %39 = arith.addf %38, %7 : vector<8x8xf32>
    %cst_19 = arith.constant dense<0xFF800000> : vector<8xf32>
    %40 = vector.multi_reduction <maximumf>, %39, %cst_19 [1] : vector<8x8xf32> to vector<8xf32>
    %41 = vector.shape_cast %40 : vector<8xf32> to vector<8x1xf32>
    %42 = vector.broadcast %41 : vector<8x1xf32> to vector<8x8xf32>
    %43 = arith.subf %39, %42 : vector<8x8xf32>
    %44 = math.exp %43 : vector<8x8xf32>
    %cst_20 = arith.constant dense<0.000000e+00> : vector<8xf32>
    %45 = vector.multi_reduction <add>, %44, %cst_20 [1] : vector<8x8xf32> to vector<8xf32>
    %46 = vector.shape_cast %45 : vector<8xf32> to vector<8x1xf32>
    %47 = tpu.reciprocal %46 : vector<8x1xf32> -> vector<8x1xf32>
    %48 = vector.broadcast %47 : vector<8x1xf32> to vector<8x8xf32>
    %49 = arith.mulf %44, %48 : vector<8x8xf32>
    %c0_21 = arith.constant 0 : index
    %c160 = arith.constant 160 : index
    %50 = vector.load %arg4[%c0_21, %c160] : memref<32x832xbf16, #tpu.memory_space<vmem>>, vector<32x32xbf16>
    %cst_22 = arith.constant dense<0.000000e+00> : vector<8x32xf32>
    %51 = tpu.matmul %9, %50, %cst_22 {dimension_numbers = #tpu.dot_dimension_numbers<[1], [0], [0], [1], [0, 0, 1, 1], [], []>} : vector<8x32xbf16>, vector<32x32xbf16>, vector<8x32xf32> -> vector<8x32xf32>
    %52 = arith.truncf %51 : vector<8x32xf32> to vector<8x32xbf16>
    %53 = arith.truncf %49 : vector<8x8xf32> to vector<8x8xbf16>
    %cst_23 = arith.constant dense<0.000000e+00> : vector<8x32xf32>
    %54 = tpu.matmul %53, %52, %cst_23 {dimension_numbers = #tpu.dot_dimension_numbers<[1], [0], [0], [1], [0, 0, 1, 1], [], []>} : vector<8x8xbf16>, vector<8x32xbf16>, vector<8x32xf32> -> vector<8x32xf32>
    %55 = arith.addf %34, %54 : vector<8x32xf32>
    %c0_24 = arith.constant 0 : index
    %c64 = arith.constant 64 : index
    %56 = vector.load %arg4[%c0_24, %c64] : memref<32x832xbf16, #tpu.memory_space<vmem>>, vector<32x32xbf16>
    %cst_25 = arith.constant dense<0.000000e+00> : vector<8x32xf32>
    %57 = tpu.matmul %8, %56, %cst_25 {dimension_numbers = #tpu.dot_dimension_numbers<[1], [0], [0], [1], [0, 0, 1, 1], [], []>} : vector<8x32xbf16>, vector<32x32xbf16>, vector<8x32xf32> -> vector<8x32xf32>
    %58 = arith.truncf %57 : vector<8x32xf32> to vector<8x32xbf16>
    %cst_26 = arith.constant dense<0.000000e+00> : vector<8x8xf32>
    %59 = tpu.matmul %58, %12, %cst_26 {dimension_numbers = #tpu.dot_dimension_numbers<[1], [1], [0], [0], [0, 0, 1, 0], [], []>} : vector<8x32xbf16>, vector<8x32xbf16>, vector<8x8xf32> -> vector<8x8xf32>
    %60 = arith.addf %59, %7 : vector<8x8xf32>
    %cst_27 = arith.constant dense<0xFF800000> : vector<8xf32>
    %61 = vector.multi_reduction <maximumf>, %60, %cst_27 [1] : vector<8x8xf32> to vector<8xf32>
    %62 = vector.shape_cast %61 : vector<8xf32> to vector<8x1xf32>
    %63 = vector.broadcast %62 : vector<8x1xf32> to vector<8x8xf32>
    %64 = arith.subf %60, %63 : vector<8x8xf32>
    %65 = math.exp %64 : vector<8x8xf32>
    %cst_28 = arith.constant dense<0.000000e+00> : vector<8xf32>
    %66 = vector.multi_reduction <add>, %65, %cst_28 [1] : vector<8x8xf32> to vector<8xf32>
    %67 = vector.shape_cast %66 : vector<8xf32> to vector<8x1xf32>
    %68 = tpu.reciprocal %67 : vector<8x1xf32> -> vector<8x1xf32>
    %69 = vector.broadcast %68 : vector<8x1xf32> to vector<8x8xf32>
    %70 = arith.mulf %65, %69 : vector<8x8xf32>
    %c0_29 = arith.constant 0 : index
    %c192 = arith.constant 192 : index
    %71 = vector.load %arg4[%c0_29, %c192] : memref<32x832xbf16, #tpu.memory_space<vmem>>, vector<32x32xbf16>
    %cst_30 = arith.constant dense<0.000000e+00> : vector<8x32xf32>
    %72 = tpu.matmul %9, %71, %cst_30 {dimension_numbers = #tpu.dot_dimension_numbers<[1], [0], [0], [1], [0, 0, 1, 1], [], []>} : vector<8x32xbf16>, vector<32x32xbf16>, vector<8x32xf32> -> vector<8x32xf32>
    %73 = arith.truncf %72 : vector<8x32xf32> to vector<8x32xbf16>
    %74 = arith.truncf %70 : vector<8x8xf32> to vector<8x8xbf16>
    %cst_31 = arith.constant dense<0.000000e+00> : vector<8x32xf32>
    %75 = tpu.matmul %74, %73, %cst_31 {dimension_numbers = #tpu.dot_dimension_numbers<[1], [0], [0], [1], [0, 0, 1, 1], [], []>} : vector<8x8xbf16>, vector<8x32xbf16>, vector<8x32xf32> -> vector<8x32xf32>
    %76 = arith.addf %55, %75 : vector<8x32xf32>
    %c0_32 = arith.constant 0 : index
    %c96 = arith.constant 96 : index
    %77 = vector.load %arg4[%c0_32, %c96] : memref<32x832xbf16, #tpu.memory_space<vmem>>, vector<32x32xbf16>
    %cst_33 = arith.constant dense<0.000000e+00> : vector<8x32xf32>
    %78 = tpu.matmul %8, %77, %cst_33 {dimension_numbers = #tpu.dot_dimension_numbers<[1], [0], [0], [1], [0, 0, 1, 1], [], []>} : vector<8x32xbf16>, vector<32x32xbf16>, vector<8x32xf32> -> vector<8x32xf32>
    %79 = arith.truncf %78 : vector<8x32xf32> to vector<8x32xbf16>
    %cst_34 = arith.constant dense<0.000000e+00> : vector<8x8xf32>
    %80 = tpu.matmul %79, %12, %cst_34 {dimension_numbers = #tpu.dot_dimension_numbers<[1], [1], [0], [0], [0, 0, 1, 0], [], []>} : vector<8x32xbf16>, vector<8x32xbf16>, vector<8x8xf32> -> vector<8x8xf32>
    %81 = arith.addf %80, %7 : vector<8x8xf32>
    %cst_35 = arith.constant dense<0xFF800000> : vector<8xf32>
    %82 = vector.multi_reduction <maximumf>, %81, %cst_35 [1] : vector<8x8xf32> to vector<8xf32>
    %83 = vector.shape_cast %82 : vector<8xf32> to vector<8x1xf32>
    %84 = vector.broadcast %83 : vector<8x1xf32> to vector<8x8xf32>
    %85 = arith.subf %81, %84 : vector<8x8xf32>
    %86 = math.exp %85 : vector<8x8xf32>
    %cst_36 = arith.constant dense<0.000000e+00> : vector<8xf32>
    %87 = vector.multi_reduction <add>, %86, %cst_36 [1] : vector<8x8xf32> to vector<8xf32>
    %88 = vector.shape_cast %87 : vector<8xf32> to vector<8x1xf32>
    %89 = tpu.reciprocal %88 : vector<8x1xf32> -> vector<8x1xf32>
    %90 = vector.broadcast %89 : vector<8x1xf32> to vector<8x8xf32>
    %91 = arith.mulf %86, %90 : vector<8x8xf32>
    %c0_37 = arith.constant 0 : index
    %c224 = arith.constant 224 : index
    %92 = vector.load %arg4[%c0_37, %c224] : memref<32x832xbf16, #tpu.memory_space<vmem>>, vector<32x32xbf16>
    %cst_38 = arith.constant dense<0.000000e+00> : vector<8x32xf32>
    %93 = tpu.matmul %9, %92, %cst_38 {dimension_numbers = #tpu.dot_dimension_numbers<[1], [0], [0], [1], [0, 0, 1, 1], [], []>} : vector<8x32xbf16>, vector<32x32xbf16>, vector<8x32xf32> -> vector<8x32xf32>
    %94 = arith.truncf %93 : vector<8x32xf32> to vector<8x32xbf16>
    %95 = arith.truncf %91 : vector<8x8xf32> to vector<8x8xbf16>
    %cst_39 = arith.constant dense<0.000000e+00> : vector<8x32xf32>
    %96 = tpu.matmul %95, %94, %cst_39 {dimension_numbers = #tpu.dot_dimension_numbers<[1], [0], [0], [1], [0, 0, 1, 1], [], []>} : vector<8x8xbf16>, vector<8x32xbf16>, vector<8x32xf32> -> vector<8x32xf32>
    %97 = arith.addf %76, %96 : vector<8x32xf32>
    %98 = arith.addf %0, %97 : vector<8x32xf32>
    %cst_40 = arith.constant dense<0.000000e+00> : vector<8xf32>
    %99 = vector.multi_reduction <add>, %98, %cst_40 [1] : vector<8x32xf32> to vector<8xf32>
    %100 = vector.shape_cast %99 : vector<8xf32> to vector<8x1xf32>
    %cst_41 = arith.constant 3.200000e+01 : f32
    %101 = vector.broadcast %cst_41 : f32 to vector<8x1xf32>
    %102 = arith.divf %100, %101 : vector<8x1xf32>
    %103 = vector.broadcast %102 : vector<8x1xf32> to vector<8x32xf32>
    %104 = arith.subf %98, %103 : vector<8x32xf32>
    %105 = arith.mulf %104, %104 : vector<8x32xf32>
    %cst_42 = arith.constant dense<0.000000e+00> : vector<8xf32>
    %106 = vector.multi_reduction <add>, %105, %cst_42 [1] : vector<8x32xf32> to vector<8xf32>
    %107 = vector.shape_cast %106 : vector<8xf32> to vector<8x1xf32>
    %cst_43 = arith.constant 3.200000e+01 : f32
    %108 = vector.broadcast %cst_43 : f32 to vector<8x1xf32>
    %109 = arith.divf %107, %108 : vector<8x1xf32>
    %110 = vector.broadcast %102 : vector<8x1xf32> to vector<8x32xf32>
    %111 = arith.subf %98, %110 : vector<8x32xf32>
    %cst_44 = arith.constant 9.99999974E-6 : f32
    %112 = vector.broadcast %cst_44 : f32 to vector<8x1xf32>
    %113 = arith.addf %109, %112 : vector<8x1xf32>
    %114 = math.rsqrt %113 : vector<8x1xf32>
    %115 = vector.broadcast %114 : vector<8x1xf32> to vector<8x32xf32>
    %116 = arith.mulf %111, %115 : vector<8x32xf32>
    %c0_45 = arith.constant 0 : index
    %c128_46 = arith.constant 128 : index
    %117 = vector.load %arg5[%c0_45, %c128_46] : memref<1x384xf32, #tpu.memory_space<vmem>>, vector<1x32xf32>
    %118 = vector.broadcast %117 : vector<1x32xf32> to vector<8x32xf32>
    %119 = arith.mulf %116, %118 : vector<8x32xf32>
    %c0_47 = arith.constant 0 : index
    %c160_48 = arith.constant 160 : index
    %120 = vector.load %arg5[%c0_47, %c160_48] : memref<1x384xf32, #tpu.memory_space<vmem>>, vector<1x32xf32>
    %121 = vector.broadcast %120 : vector<1x32xf32> to vector<8x32xf32>
    %122 = arith.addf %119, %121 : vector<8x32xf32>
    %c0_49 = arith.constant 0 : index
    %c0_50 = arith.constant 0 : index
    %c0_51 = arith.constant 0 : index
    %123 = vector.load %arg3[%c0_49, %c0_50, %c0_51] : memref<1x8x8xf32, #tpu.memory_space<vmem>>, vector<1x8x8xf32>
    %124 = vector.shape_cast %123 : vector<1x8x8xf32> to vector<8x8xf32>
    %cst_52 = arith.constant -1.000000e+30 : f32
    %125 = vector.broadcast %cst_52 : f32 to vector<8x8xf32>
    %126 = arith.mulf %124, %125 : vector<8x8xf32>
    %127 = arith.truncf %122 : vector<8x32xf32> to vector<8x32xbf16>
    %128 = arith.truncf %1 : vector<8x32xf32> to vector<8x32xbf16>
    %c0_53 = arith.constant 0 : index
    %c800 = arith.constant 800 : index
    %129 = vector.load %arg4[%c0_53, %c800] : memref<32x832xbf16, #tpu.memory_space<vmem>>, vector<32x32xbf16>
    %cst_54 = arith.constant dense<0.000000e+00> : vector<8x32xf32>
    %130 = tpu.matmul %128, %129, %cst_54 {dimension_numbers = #tpu.dot_dimension_numbers<[1], [0], [0], [1], [0, 0, 1, 1], [], []>} : vector<8x32xbf16>, vector<32x32xbf16>, vector<8x32xf32> -> vector<8x32xf32>
    %131 = arith.truncf %130 : vector<8x32xf32> to vector<8x32xbf16>
    %cst_55 = arith.constant 0.000000e+00 : f32
    %132 = vector.broadcast %cst_55 : f32 to vector<8x32xf32>
    %c0_56 = arith.constant 0 : index
    %c256 = arith.constant 256 : index
    %133 = vector.load %arg4[%c0_56, %c256] : memref<32x832xbf16, #tpu.memory_space<vmem>>, vector<32x32xbf16>
    %cst_57 = arith.constant dense<0.000000e+00> : vector<8x32xf32>
    %134 = tpu.matmul %127, %133, %cst_57 {dimension_numbers = #tpu.dot_dimension_numbers<[1], [0], [0], [1], [0, 0, 1, 1], [], []>} : vector<8x32xbf16>, vector<32x32xbf16>, vector<8x32xf32> -> vector<8x32xf32>
    %135 = arith.truncf %134 : vector<8x32xf32> to vector<8x32xbf16>
    %cst_58 = arith.constant dense<0.000000e+00> : vector<8x8xf32>
    %136 = tpu.matmul %135, %131, %cst_58 {dimension_numbers = #tpu.dot_dimension_numbers<[1], [1], [0], [0], [0, 0, 1, 0], [], []>} : vector<8x32xbf16>, vector<8x32xbf16>, vector<8x8xf32> -> vector<8x8xf32>
    %137 = arith.addf %136, %126 : vector<8x8xf32>
    %cst_59 = arith.constant dense<0xFF800000> : vector<8xf32>
    %138 = vector.multi_reduction <maximumf>, %137, %cst_59 [1] : vector<8x8xf32> to vector<8xf32>
    %139 = vector.shape_cast %138 : vector<8xf32> to vector<8x1xf32>
    %140 = vector.broadcast %139 : vector<8x1xf32> to vector<8x8xf32>
    %141 = arith.subf %137, %140 : vector<8x8xf32>
    %142 = math.exp %141 : vector<8x8xf32>
    %cst_60 = arith.constant dense<0.000000e+00> : vector<8xf32>
    %143 = vector.multi_reduction <add>, %142, %cst_60 [1] : vector<8x8xf32> to vector<8xf32>
    %144 = vector.shape_cast %143 : vector<8xf32> to vector<8x1xf32>
    %145 = tpu.reciprocal %144 : vector<8x1xf32> -> vector<8x1xf32>
    %146 = vector.broadcast %145 : vector<8x1xf32> to vector<8x8xf32>
    %147 = arith.mulf %142, %146 : vector<8x8xf32>
    %c0_61 = arith.constant 0 : index
    %c384 = arith.constant 384 : index
    %148 = vector.load %arg4[%c0_61, %c384] : memref<32x832xbf16, #tpu.memory_space<vmem>>, vector<32x32xbf16>
    %cst_62 = arith.constant dense<0.000000e+00> : vector<8x32xf32>
    %149 = tpu.matmul %128, %148, %cst_62 {dimension_numbers = #tpu.dot_dimension_numbers<[1], [0], [0], [1], [0, 0, 1, 1], [], []>} : vector<8x32xbf16>, vector<32x32xbf16>, vector<8x32xf32> -> vector<8x32xf32>
    %150 = arith.truncf %149 : vector<8x32xf32> to vector<8x32xbf16>
    %151 = arith.truncf %147 : vector<8x8xf32> to vector<8x8xbf16>
    %cst_63 = arith.constant dense<0.000000e+00> : vector<8x32xf32>
    %152 = tpu.matmul %151, %150, %cst_63 {dimension_numbers = #tpu.dot_dimension_numbers<[1], [0], [0], [1], [0, 0, 1, 1], [], []>} : vector<8x8xbf16>, vector<8x32xbf16>, vector<8x32xf32> -> vector<8x32xf32>
    %153 = arith.addf %132, %152 : vector<8x32xf32>
    %c0_64 = arith.constant 0 : index
    %c288 = arith.constant 288 : index
    %154 = vector.load %arg4[%c0_64, %c288] : memref<32x832xbf16, #tpu.memory_space<vmem>>, vector<32x32xbf16>
    %cst_65 = arith.constant dense<0.000000e+00> : vector<8x32xf32>
    %155 = tpu.matmul %127, %154, %cst_65 {dimension_numbers = #tpu.dot_dimension_numbers<[1], [0], [0], [1], [0, 0, 1, 1], [], []>} : vector<8x32xbf16>, vector<32x32xbf16>, vector<8x32xf32> -> vector<8x32xf32>
    %156 = arith.truncf %155 : vector<8x32xf32> to vector<8x32xbf16>
    %cst_66 = arith.constant dense<0.000000e+00> : vector<8x8xf32>
    %157 = tpu.matmul %156, %131, %cst_66 {dimension_numbers = #tpu.dot_dimension_numbers<[1], [1], [0], [0], [0, 0, 1, 0], [], []>} : vector<8x32xbf16>, vector<8x32xbf16>, vector<8x8xf32> -> vector<8x8xf32>
    %158 = arith.addf %157, %126 : vector<8x8xf32>
    %cst_67 = arith.constant dense<0xFF800000> : vector<8xf32>
    %159 = vector.multi_reduction <maximumf>, %158, %cst_67 [1] : vector<8x8xf32> to vector<8xf32>
    %160 = vector.shape_cast %159 : vector<8xf32> to vector<8x1xf32>
    %161 = vector.broadcast %160 : vector<8x1xf32> to vector<8x8xf32>
    %162 = arith.subf %158, %161 : vector<8x8xf32>
    %163 = math.exp %162 : vector<8x8xf32>
    %cst_68 = arith.constant dense<0.000000e+00> : vector<8xf32>
    %164 = vector.multi_reduction <add>, %163, %cst_68 [1] : vector<8x8xf32> to vector<8xf32>
    %165 = vector.shape_cast %164 : vector<8xf32> to vector<8x1xf32>
    %166 = tpu.reciprocal %165 : vector<8x1xf32> -> vector<8x1xf32>
    %167 = vector.broadcast %166 : vector<8x1xf32> to vector<8x8xf32>
    %168 = arith.mulf %163, %167 : vector<8x8xf32>
    %c0_69 = arith.constant 0 : index
    %c416 = arith.constant 416 : index
    %169 = vector.load %arg4[%c0_69, %c416] : memref<32x832xbf16, #tpu.memory_space<vmem>>, vector<32x32xbf16>
    %cst_70 = arith.constant dense<0.000000e+00> : vector<8x32xf32>
    %170 = tpu.matmul %128, %169, %cst_70 {dimension_numbers = #tpu.dot_dimension_numbers<[1], [0], [0], [1], [0, 0, 1, 1], [], []>} : vector<8x32xbf16>, vector<32x32xbf16>, vector<8x32xf32> -> vector<8x32xf32>
    %171 = arith.truncf %170 : vector<8x32xf32> to vector<8x32xbf16>
    %172 = arith.truncf %168 : vector<8x8xf32> to vector<8x8xbf16>
    %cst_71 = arith.constant dense<0.000000e+00> : vector<8x32xf32>
    %173 = tpu.matmul %172, %171, %cst_71 {dimension_numbers = #tpu.dot_dimension_numbers<[1], [0], [0], [1], [0, 0, 1, 1], [], []>} : vector<8x8xbf16>, vector<8x32xbf16>, vector<8x32xf32> -> vector<8x32xf32>
    %174 = arith.addf %153, %173 : vector<8x32xf32>
    %c0_72 = arith.constant 0 : index
    %c320 = arith.constant 320 : index
    %175 = vector.load %arg4[%c0_72, %c320] : memref<32x832xbf16, #tpu.memory_space<vmem>>, vector<32x32xbf16>
    %cst_73 = arith.constant dense<0.000000e+00> : vector<8x32xf32>
    %176 = tpu.matmul %127, %175, %cst_73 {dimension_numbers = #tpu.dot_dimension_numbers<[1], [0], [0], [1], [0, 0, 1, 1], [], []>} : vector<8x32xbf16>, vector<32x32xbf16>, vector<8x32xf32> -> vector<8x32xf32>
    %177 = arith.truncf %176 : vector<8x32xf32> to vector<8x32xbf16>
    %cst_74 = arith.constant dense<0.000000e+00> : vector<8x8xf32>
    %178 = tpu.matmul %177, %131, %cst_74 {dimension_numbers = #tpu.dot_dimension_numbers<[1], [1], [0], [0], [0, 0, 1, 0], [], []>} : vector<8x32xbf16>, vector<8x32xbf16>, vector<8x8xf32> -> vector<8x8xf32>
    %179 = arith.addf %178, %126 : vector<8x8xf32>
    %cst_75 = arith.constant dense<0xFF800000> : vector<8xf32>
    %180 = vector.multi_reduction <maximumf>, %179, %cst_75 [1] : vector<8x8xf32> to vector<8xf32>
    %181 = vector.shape_cast %180 : vector<8xf32> to vector<8x1xf32>
    %182 = vector.broadcast %181 : vector<8x1xf32> to vector<8x8xf32>
    %183 = arith.subf %179, %182 : vector<8x8xf32>
    %184 = math.exp %183 : vector<8x8xf32>
    %cst_76 = arith.constant dense<0.000000e+00> : vector<8xf32>
    %185 = vector.multi_reduction <add>, %184, %cst_76 [1] : vector<8x8xf32> to vector<8xf32>
    %186 = vector.shape_cast %185 : vector<8xf32> to vector<8x1xf32>
    %187 = tpu.reciprocal %186 : vector<8x1xf32> -> vector<8x1xf32>
    %188 = vector.broadcast %187 : vector<8x1xf32> to vector<8x8xf32>
    %189 = arith.mulf %184, %188 : vector<8x8xf32>
    %c0_77 = arith.constant 0 : index
    %c448 = arith.constant 448 : index
    %190 = vector.load %arg4[%c0_77, %c448] : memref<32x832xbf16, #tpu.memory_space<vmem>>, vector<32x32xbf16>
    %cst_78 = arith.constant dense<0.000000e+00> : vector<8x32xf32>
    %191 = tpu.matmul %128, %190, %cst_78 {dimension_numbers = #tpu.dot_dimension_numbers<[1], [0], [0], [1], [0, 0, 1, 1], [], []>} : vector<8x32xbf16>, vector<32x32xbf16>, vector<8x32xf32> -> vector<8x32xf32>
    %192 = arith.truncf %191 : vector<8x32xf32> to vector<8x32xbf16>
    %193 = arith.truncf %189 : vector<8x8xf32> to vector<8x8xbf16>
    %cst_79 = arith.constant dense<0.000000e+00> : vector<8x32xf32>
    %194 = tpu.matmul %193, %192, %cst_79 {dimension_numbers = #tpu.dot_dimension_numbers<[1], [0], [0], [1], [0, 0, 1, 1], [], []>} : vector<8x8xbf16>, vector<8x32xbf16>, vector<8x32xf32> -> vector<8x32xf32>
    %195 = arith.addf %174, %194 : vector<8x32xf32>
    %c0_80 = arith.constant 0 : index
    %c352 = arith.constant 352 : index
    %196 = vector.load %arg4[%c0_80, %c352] : memref<32x832xbf16, #tpu.memory_space<vmem>>, vector<32x32xbf16>
    %cst_81 = arith.constant dense<0.000000e+00> : vector<8x32xf32>
    %197 = tpu.matmul %127, %196, %cst_81 {dimension_numbers = #tpu.dot_dimension_numbers<[1], [0], [0], [1], [0, 0, 1, 1], [], []>} : vector<8x32xbf16>, vector<32x32xbf16>, vector<8x32xf32> -> vector<8x32xf32>
    %198 = arith.truncf %197 : vector<8x32xf32> to vector<8x32xbf16>
    %cst_82 = arith.constant dense<0.000000e+00> : vector<8x8xf32>
    %199 = tpu.matmul %198, %131, %cst_82 {dimension_numbers = #tpu.dot_dimension_numbers<[1], [1], [0], [0], [0, 0, 1, 0], [], []>} : vector<8x32xbf16>, vector<8x32xbf16>, vector<8x8xf32> -> vector<8x8xf32>
    %200 = arith.addf %199, %126 : vector<8x8xf32>
    %cst_83 = arith.constant dense<0xFF800000> : vector<8xf32>
    %201 = vector.multi_reduction <maximumf>, %200, %cst_83 [1] : vector<8x8xf32> to vector<8xf32>
    %202 = vector.shape_cast %201 : vector<8xf32> to vector<8x1xf32>
    %203 = vector.broadcast %202 : vector<8x1xf32> to vector<8x8xf32>
    %204 = arith.subf %200, %203 : vector<8x8xf32>
    %205 = math.exp %204 : vector<8x8xf32>
    %cst_84 = arith.constant dense<0.000000e+00> : vector<8xf32>
    %206 = vector.multi_reduction <add>, %205, %cst_84 [1] : vector<8x8xf32> to vector<8xf32>
    %207 = vector.shape_cast %206 : vector<8xf32> to vector<8x1xf32>
    %208 = tpu.reciprocal %207 : vector<8x1xf32> -> vector<8x1xf32>
    %209 = vector.broadcast %208 : vector<8x1xf32> to vector<8x8xf32>
    %210 = arith.mulf %205, %209 : vector<8x8xf32>
    %c0_85 = arith.constant 0 : index
    %c480 = arith.constant 480 : index
    %211 = vector.load %arg4[%c0_85, %c480] : memref<32x832xbf16, #tpu.memory_space<vmem>>, vector<32x32xbf16>
    %cst_86 = arith.constant dense<0.000000e+00> : vector<8x32xf32>
    %212 = tpu.matmul %128, %211, %cst_86 {dimension_numbers = #tpu.dot_dimension_numbers<[1], [0], [0], [1], [0, 0, 1, 1], [], []>} : vector<8x32xbf16>, vector<32x32xbf16>, vector<8x32xf32> -> vector<8x32xf32>
    %213 = arith.truncf %212 : vector<8x32xf32> to vector<8x32xbf16>
    %214 = arith.truncf %210 : vector<8x8xf32> to vector<8x8xbf16>
    %cst_87 = arith.constant dense<0.000000e+00> : vector<8x32xf32>
    %215 = tpu.matmul %214, %213, %cst_87 {dimension_numbers = #tpu.dot_dimension_numbers<[1], [0], [0], [1], [0, 0, 1, 1], [], []>} : vector<8x8xbf16>, vector<8x32xbf16>, vector<8x32xf32> -> vector<8x32xf32>
    %216 = arith.addf %195, %215 : vector<8x32xf32>
    %217 = arith.addf %122, %216 : vector<8x32xf32>
    %cst_88 = arith.constant dense<0.000000e+00> : vector<8xf32>
    %218 = vector.multi_reduction <add>, %217, %cst_88 [1] : vector<8x32xf32> to vector<8xf32>
    %219 = vector.shape_cast %218 : vector<8xf32> to vector<8x1xf32>
    %cst_89 = arith.constant 3.200000e+01 : f32
    %220 = vector.broadcast %cst_89 : f32 to vector<8x1xf32>
    %221 = arith.divf %219, %220 : vector<8x1xf32>
    %222 = vector.broadcast %221 : vector<8x1xf32> to vector<8x32xf32>
    %223 = arith.subf %217, %222 : vector<8x32xf32>
    %224 = arith.mulf %223, %223 : vector<8x32xf32>
    %cst_90 = arith.constant dense<0.000000e+00> : vector<8xf32>
    %225 = vector.multi_reduction <add>, %224, %cst_90 [1] : vector<8x32xf32> to vector<8xf32>
    %226 = vector.shape_cast %225 : vector<8xf32> to vector<8x1xf32>
    %cst_91 = arith.constant 3.200000e+01 : f32
    %227 = vector.broadcast %cst_91 : f32 to vector<8x1xf32>
    %228 = arith.divf %226, %227 : vector<8x1xf32>
    %229 = vector.broadcast %221 : vector<8x1xf32> to vector<8x32xf32>
    %230 = arith.subf %217, %229 : vector<8x32xf32>
    %cst_92 = arith.constant 9.99999974E-6 : f32
    %231 = vector.broadcast %cst_92 : f32 to vector<8x1xf32>
    %232 = arith.addf %228, %231 : vector<8x1xf32>
    %233 = math.rsqrt %232 : vector<8x1xf32>
    %234 = vector.broadcast %233 : vector<8x1xf32> to vector<8x32xf32>
    %235 = arith.mulf %230, %234 : vector<8x32xf32>
    %c0_93 = arith.constant 0 : index
    %c192_94 = arith.constant 192 : index
    %236 = vector.load %arg5[%c0_93, %c192_94] : memref<1x384xf32, #tpu.memory_space<vmem>>, vector<1x32xf32>
    %237 = vector.broadcast %236 : vector<1x32xf32> to vector<8x32xf32>
    %238 = arith.mulf %235, %237 : vector<8x32xf32>
    %c0_95 = arith.constant 0 : index
    %c224_96 = arith.constant 224 : index
    %239 = vector.load %arg5[%c0_95, %c224_96] : memref<1x384xf32, #tpu.memory_space<vmem>>, vector<1x32xf32>
    %240 = vector.broadcast %239 : vector<1x32xf32> to vector<8x32xf32>
    %241 = arith.addf %238, %240 : vector<8x32xf32>
    %242 = arith.truncf %241 : vector<8x32xf32> to vector<8x32xbf16>
    %c0_97 = arith.constant 0 : index
    %c512 = arith.constant 512 : index
    %243 = vector.load %arg4[%c0_97, %c512] : memref<32x832xbf16, #tpu.memory_space<vmem>>, vector<32x128xbf16>
    %cst_98 = arith.constant dense<0.000000e+00> : vector<8x128xf32>
    %244 = tpu.matmul %242, %243, %cst_98 {dimension_numbers = #tpu.dot_dimension_numbers<[1], [0], [0], [1], [0, 0, 1, 1], [], []>} : vector<8x32xbf16>, vector<32x128xbf16>, vector<8x128xf32> -> vector<8x128xf32>
    %c0_99 = arith.constant 0 : index
    %c0_100 = arith.constant 0 : index
    %245 = vector.load %arg5[%c0_99, %c0_100] : memref<1x384xf32, #tpu.memory_space<vmem>>, vector<1x128xf32>
    %246 = vector.broadcast %245 : vector<1x128xf32> to vector<8x128xf32>
    %247 = arith.addf %244, %246 : vector<8x128xf32>
    %cst_101 = arith.constant 0.000000e+00 : f32
    %248 = vector.broadcast %cst_101 : f32 to vector<8x128xf32>
    %249 = arith.maximumf %247, %248 : vector<8x128xf32>
    %250 = arith.truncf %249 : vector<8x128xf32> to vector<8x128xbf16>
    %c0_102 = arith.constant 0 : index
    %c640 = arith.constant 640 : index
    %251 = vector.load %arg4[%c0_102, %c640] : memref<32x832xbf16, #tpu.memory_space<vmem>>, vector<32x128xbf16>
    %cst_103 = arith.constant dense<0.000000e+00> : vector<8x32xf32>
    %252 = tpu.matmul %250, %251, %cst_103 {dimension_numbers = #tpu.dot_dimension_numbers<[1], [1], [0], [0], [0, 0, 1, 0], [], []>} : vector<8x128xbf16>, vector<32x128xbf16>, vector<8x32xf32> -> vector<8x32xf32>
    %c0_104 = arith.constant 0 : index
    %c320_105 = arith.constant 320 : index
    %253 = vector.load %arg5[%c0_104, %c320_105] : memref<1x384xf32, #tpu.memory_space<vmem>>, vector<1x32xf32>
    %254 = vector.broadcast %253 : vector<1x32xf32> to vector<8x32xf32>
    %255 = arith.addf %252, %254 : vector<8x32xf32>
    %256 = arith.addf %241, %255 : vector<8x32xf32>
    %cst_106 = arith.constant dense<0.000000e+00> : vector<8xf32>
    %257 = vector.multi_reduction <add>, %256, %cst_106 [1] : vector<8x32xf32> to vector<8xf32>
    %258 = vector.shape_cast %257 : vector<8xf32> to vector<8x1xf32>
    %cst_107 = arith.constant 3.200000e+01 : f32
    %259 = vector.broadcast %cst_107 : f32 to vector<8x1xf32>
    %260 = arith.divf %258, %259 : vector<8x1xf32>
    %261 = vector.broadcast %260 : vector<8x1xf32> to vector<8x32xf32>
    %262 = arith.subf %256, %261 : vector<8x32xf32>
    %263 = arith.mulf %262, %262 : vector<8x32xf32>
    %cst_108 = arith.constant dense<0.000000e+00> : vector<8xf32>
    %264 = vector.multi_reduction <add>, %263, %cst_108 [1] : vector<8x32xf32> to vector<8xf32>
    %265 = vector.shape_cast %264 : vector<8xf32> to vector<8x1xf32>
    %cst_109 = arith.constant 3.200000e+01 : f32
    %266 = vector.broadcast %cst_109 : f32 to vector<8x1xf32>
    %267 = arith.divf %265, %266 : vector<8x1xf32>
    %268 = vector.broadcast %260 : vector<8x1xf32> to vector<8x32xf32>
    %269 = arith.subf %256, %268 : vector<8x32xf32>
    %cst_110 = arith.constant 9.99999974E-6 : f32
    %270 = vector.broadcast %cst_110 : f32 to vector<8x1xf32>
    %271 = arith.addf %267, %270 : vector<8x1xf32>
    %272 = math.rsqrt %271 : vector<8x1xf32>
    %273 = vector.broadcast %272 : vector<8x1xf32> to vector<8x32xf32>
    %274 = arith.mulf %269, %273 : vector<8x32xf32>
    %c0_111 = arith.constant 0 : index
    %c256_112 = arith.constant 256 : index
    %275 = vector.load %arg5[%c0_111, %c256_112] : memref<1x384xf32, #tpu.memory_space<vmem>>, vector<1x32xf32>
    %276 = vector.broadcast %275 : vector<1x32xf32> to vector<8x32xf32>
    %277 = arith.mulf %274, %276 : vector<8x32xf32>
    %c0_113 = arith.constant 0 : index
    %c288_114 = arith.constant 288 : index
    %278 = vector.load %arg5[%c0_113, %c288_114] : memref<1x384xf32, #tpu.memory_space<vmem>>, vector<1x32xf32>
    %279 = vector.broadcast %278 : vector<1x32xf32> to vector<8x32xf32>
    %280 = arith.addf %277, %279 : vector<8x32xf32>
    %c0_115 = arith.constant 0 : index
    %c0_116 = arith.constant 0 : index
    %281 = vector.load %arg6[%c0_115, %c0_116] : memref<8x32xf32, #tpu.memory_space<vmem>>, vector<8x32xf32>
    tpu.vector_store %arg6[%c0_115, %c0_116], %280 {strides = array<i32>} : memref<8x32xf32, #tpu.memory_space<vmem>>, vector<8x32xf32>,
    return
  }
  func.func @transform_0(%arg0: i32) -> (i32, i32) {
    %c0_i32 = arith.constant 0 : i32
    %c0_i32_0 = arith.constant 0 : i32
    return %arg0, %c0_i32 : i32, i32
  }
  func.func @transform_1(%arg0: i32) -> (i32, i32) {
    %c0_i32 = arith.constant 0 : i32
    %c0_i32_0 = arith.constant 0 : i32
    return %arg0, %c0_i32 : i32, i32
  }
  func.func @transform_2(%arg0: i32) -> (i32, i32, i32) {
    %c0_i32 = arith.constant 0 : i32
    %c0_i32_0 = arith.constant 0 : i32
    %c0_i32_1 = arith.constant 0 : i32
    return %arg0, %c0_i32, %c0_i32_0 : i32, i32, i32
  }
  func.func @transform_3(%arg0: i32) -> (i32, i32) {
    %c0_i32 = arith.constant 0 : i32
    %c0_i32_0 = arith.constant 0 : i32
    %c0_i32_1 = arith.constant 0 : i32
    return %c0_i32, %c0_i32_0 : i32, i32
  }
  func.func @transform_4(%arg0: i32) -> (i32, i32) {
    %c0_i32 = arith.constant 0 : i32
    %c0_i32_0 = arith.constant 0 : i32
    %c0_i32_1 = arith.constant 0 : i32
    return %c0_i32, %c0_i32_0 : i32, i32
  }
  func.func @transform_5(%arg0: i32) -> (i32, i32) {
    %c0_i32 = arith.constant 0 : i32
    %c0_i32_0 = arith.constant 0 : i32
    return %arg0, %c0_i32 : i32, i32
  }
}

</mosaic_0001>

<bundles_post_ra>
// kernel: decoder_layer_forward.1
= control target key start
LH: loop header
LB: loop body
LE: loop exit
PB: predicated region body
PF: predicated region fallthrough
CT: control target
= control target key end

     0   :  { %10 = vsyncpa [#allocation3], 0  ;;  %s1727_s18 = smov 0   ;;  %s1927_s0 = inlined_call_operand.vmem [shape: f32[16,32], index: 0, kind: input, shape index: {}]   ;;  %s1928_s1 = inlined_call_operand.vmem [shape: f32[16,32], index: 1, kind: input, shape index: {}]   ;;  %s1929_s2 = inlined_call_operand.vmem [shape: f32[2,8,8], index: 2, kind: input, shape index: {}]   ;;  %s1930_s3 = inlined_call_operand.hbm [shape: bf16[32,832], index: 3, kind: input, shape index: {}]   ;;  %s1931_s4 = inlined_call_operand.vmem [shape: f32[1,384], index: 4, kind: input, shape index: {}]   ;;  %s1932_s5 = inlined_call_operand.vmem [shape: f32[16,32], index: 5, kind: output, shape index: {}]  }
   0x1 LB: > { %s178_s21 = sshll.u32 %s1930_s3, 4  ;;  %s1460_s22 = sadd.s32 4294967295, %s1687_s18   ;;  %s1687_s18 = sphi %s1727_s18, %s16_s18   ;;  %s179_s21 = int_to_ptr.hbm [resolvable:$true] %s178_s21 }
   0x2   : > { %p1462_p0 = scmp.ge.s32.totalorder %s1687_s18, 1  ;;  %p167_p1 = scmp.lt.s32.totalorder %s1687_s18, 3 }
   0x3   : > { %p1586_p2 = scmp.eq.s32.totalorder %s1460_s22, 0  ;;  %s1689_s23 = smov [#allocation2]  }
   0x4   : > { %p168_p3 = pnand %p1462_p0, %p167_p1  ;;  %s180_s24 = sshll.u32 %s1689_s23, 4  ;;  %s181_s24 = int_to_ptr.vmem [resolvable:$true] %s180_s24 }
   0x5   : > { %s1690_s25 = smov 448   ;;  %s1691_s26 = smov 28  }
   0x6   : > { %p1582_p4 = pneg %p168_p3  ;;  %220 = sbr.rel (%p168_p3) target bundleno = 2871 (0xb37), region = 40 }
   0x8   : > { %p1583_p5 = pnand %p1586_p2, %p1582_p4 }
   0xa   : > { %1585 = dma.hbm_to_vmem [thread:$0]  (!%p1583_p5), %s179_s21, 1792, %s181_s24, [#allocation3], %s1690_s25, %s1690_s25, %s1691_s26  }
   0xb   : > { %1682 = dma.done.wait (%p1586_p2), [#allocation3], 1792  }
   0xc   : > { %1684 = vsyncadd (%p1586_p2), [#allocation3], 4294965504  ;;  %p255_p6 = scmp.lt.s32.totalorder %s1460_s22, 1  ;;  %v1486_v0 = vld [vmem:[#allocation2 + $0x38] sm:$0xf]  ;;  %s1692_s6 = smov 96   ;;  %v274_v38 = vlaneseq }
   0xd   : > { %v1567_v1 = vld [vmem:[#allocation2 + $0x50] sm:$0xf0]  ;;  %v1482_v2 = vld [vmem:[#allocation2] sm:$0xf]  ;;  %v1566_v4 = vld [vmem:[#allocation2 + $0x18] sm:$0xf0] }
   0xe   : > { %s1934_s22 = smov (!%p255_p6, %s1460_s22), 1  ;;  %v1487_v3 = vor.u32 %v1567_v1, %v1486_v0  ;;  %v1477_v5 = vld [vmem:[#allocation2 + $0x50] sm:$0xf]  ;;  %v1565_v6 = vld [vmem:[#allocation2 + $0x68] sm:$0xf0]  ;;  %s1693_s7 = smov 64   ;;  %v1483_v12 = vor.u32 %v1566_v4, %v1482_v2 }
   0xf   : > { %s1738_s27 = sshll.u32 %s1934_s22, 3  ;;  %v1744_v7 = vor.u32 %v1565_v6, %v1477_v5  ;;  %v1473_v8 = vld [vmem:[#allocation2 + $0x18] sm:$0xf]  ;;  %v1564_v9 = vld [vmem:[#allocation2 + $0x30] sm:$0xf0]  ;;  %s1694_s8 = smov 32  }
  0x10   : > { %s258_s30 = scalar_lea.vmem %s1927_s0, %s1738_s27  ;;  %422 = vrot.lane.b32.xlu0 %v1487_v3, %s1692_s6  ;;  %337 = vmatpush.bf16.msra.mxu1 %v1487_v3  ;;  %v1748_v10 = vor.u32 %v1564_v9, %v1473_v8  ;;  %vm297_vm0 = vcmask 261120   ;;  %v1496_v14 = vld [vmem:[#allocation2 + $0x3c] sm:$0xf]  ;;  %v1569_v15 = vld [vmem:[#allocation2 + $0x54] sm:$0xf0]  ;;  %v275_v39 = vshrl.u32 %v274_v38, 7  ;;  %s262_s13 = scalar_lea.vmem %s1928_s1, %s1738_s27 }
  0x11   : > { %307 = vmatpush.bf16.msra.mxu0 %v1744_v7  ;;  %v1750_v11 = vld [vmem:[%s258_s30] sm:$0xff]  ;;  %542 = vrot.lane.b32.xlu1 %v1487_v3, %s1693_s7  ;;  %v1497_v16 = vor.u32 %v1569_v15, %v1496_v14  ;;  %v277_v40 = vand.u32 127, %v274_v38  ;;  %v1695_v41 = vmov 0.0   ;;  %vm364_vm2 = vcmask 64512   ;;  %s266_s16 = scalar_lea.vmem %s1929_s2, %s1738_s27  ;;  %s270_s24 = scalar_lea.vmem %s1932_s5, %s1738_s27 }
  0x12   : > { %643 = vrot.lane.b32.xlu2 %v1487_v3, %s1694_s8  ;;  %v1756_v13 = vpack.c.bf16 %v1750_v11, %v1750_v11  ;;  %v1492_v17 = vld [vmem:[#allocation2 + $0x4] sm:$0xf]  ;;  %v1568_v18 = vld [vmem:[#allocation2 + $0x1c] sm:$0xf0]  ;;  %vm504_vm3 = vcmask 1043456  }
  0x13   : > { %v1493_v19 = vor.u32 %v1568_v18, %v1492_v17  ;;  %411 = vmatpush.bf16.msra.mxu3 %v1497_v16  ;;  %vm278_vm1 = vcmp.gt.s32.totalorder %v277_v40, %v275_v39 }
  0x14   : > { %338 = vmatpush.bf16.msra.mxu1 %v1483_v12  ;;  %v279_v42 = vsel %vm278_vm1, -1e+30, %v1695_v41 }
  0x15   : > { %308 = vmatpush.bf16.msra.mxu0 %v1748_v10 }
  0x17   : > { %1488 = vmatmul.msk.bf16.vlgmr.msra.gmra.mxu1 %vm297_vm0, %v1756_v13  ;;  %412 = vmatpush.bf16.msra.mxu3 %v1493_v19 }
  0x18   : > { %420 = vrot.lane.b32.xlu0 %v1483_v12, %s1692_s6  ;;  %1479 = vmatmul.msk.bf16.vlgmr.msra.gmra.mxu0 %vm297_vm0, %v1756_v13 }
  0x19   : > { %540 = vrot.lane.b32.xlu1 %v1483_v12, %s1693_s7 }
  0x1a   : > { %641 = vrot.lane.b32.xlu2 %v1483_v12, %s1694_s8  ;;  %1498 = vmatmul.msk.bf16.vlgmr.msra.gmra.mxu3 %vm297_vm0, %v1756_v13 }
  0x20   : > { %482 = vrot.lane.b32.xlu0 %v1497_v16, %s1692_s6 }
  0x21   : > { %480 = vrot.lane.b32.xlu1 %v1493_v19, %s1692_s6 }
  0x29   : > { %602 = vrot.lane.b32.xlu1 %v1497_v16, %s1693_s7 }
  0x31   : > { %600 = vrot.lane.b32.xlu1 %v1493_v19, %s1693_s7 }
  0x39   : > { %703 = vrot.lane.b32.xlu1 %v1497_v16, %s1694_s8 }
  0x41   : > { %701 = vrot.lane.b32.xlu1 %v1493_v19, %s1694_s8 }
  0x6c   : > { %v644_v33 = vpop.permute.xlu2 %643 }
  0x74   : > { %v642_v36 = vpop.permute.xlu2 %641 }
  0x82   : > { %v423_v20 = vpop.permute.xlu0 %422 }
  0x83   : > { %432 = vmatpush.bf16.msrb.mxu0 %v423_v20  ;;  %v543_v22 = vpop.permute.xlu1 %542 }
  0x8a   : > { %v421_v21 = vpop.permute.xlu0 %420 }
  0x8b   : > { %433 = vmatpush.bf16.msrb.mxu0 %v421_v21  ;;  %v541_v29 = vpop.permute.xlu1 %540 }
  0x8e   : > { %1499 = vmatmul.msk.bf16.vlgmr.msrb.gmra.mxu0 %vm297_vm0, %v1756_v13 }
  0x92   : > { %v483_v31 = vpop.permute.xlu0 %482 }
  0x93   : > { %v481_v32 = vpop.permute.xlu1 %480 }
  0x94   : > { %v340_v23 = vpop.f32.mrf.mxu1 }
  0x95   : > { %v310_v24 = vpop.f32.mrf.mxu0  ;;  %v344_v27 = vpack.c.bf16 %v340_v23, %v340_v23 }
  0x96   : > { %v314_v25 = vpack.c.bf16 %v310_v24, %v310_v24 }
  0x98   : > { %v349_v26 = vsel %vm297_vm0, %v314_v25, 0 }
  0x99   : > { %358 = vmatpush.bf16.xpose.msra.mxu2 %v349_v26  ;;  %450 = vmatpush.bf16.xpose.msrb.mxu1 %v349_v26 }
  0x9b   : > { %v603_v57 = vpop.permute.xlu1 %602 }
  0x9c   : > { %v342_v28 = vpop.f32.mrf.mxu1 }
  0x9d   : > { %v312_v30 = vpop.f32.mrf.mxu0  ;;  %v414_v23 = vpop.f32.mrf.mxu3 }
  0x9e   : > { %v418_v24 = vpack.c.bf16 %v414_v23, %v414_v23 }
  0xa0   : > { %1489 = vmatmul.msk.bf16.vlgmr.msra.gmra.mxu2 %vm297_vm0, %v344_v27  ;;  %v525_v25 = vsel %vm504_vm3, %v418_v24, 0 }
  0xa1   : > { %552 = vmatpush.bf16.msra.mxu1 %v543_v22  ;;  %492 = vmatpush.bf16.msrb.mxu2 %v483_v31 }
  0xa2   : > { %534 = vmatpush.bf16.msra.mxu0 %v525_v25 }
  0xa3   : > { %v601_v58 = vpop.permute.xlu1 %600 }
  0xa5   : > { %553 = vmatpush.bf16.msra.mxu1 %v541_v29  ;;  %493 = vmatpush.bf16.msrb.mxu2 %v481_v32  ;;  %v416_v27 = vpop.f32.mrf.mxu3 }
  0xa9   : > { %570 = vmatpush.bf16.xpose.msra.mxu2 %v349_v26 }
  0xab   : > { %v1789_v60 = vpop.permute.xlu1 %703 }
  0xb0   : > { %1501 = vmatmul.msk.bf16.vlgmr.msrb.gmra.mxu2 %vm297_vm0, %v1756_v13 }
  0xb1   : > { %671 = vmatpush.bf16.xpose.msrb.mxu2 %v349_v26 }
  0xb3   : > { %v1791_v63 = vpop.permute.xlu1 %701 }
 0x10b   : > { %v435_v34 = vpop.f32.mrf.mxu0 }
 0x10c   : > { %v439_v35 = vpack.c.bf16 %v435_v34, %v435_v34 }
 0x10e   : > { %1500 = vmatmul.msk.bf16.vlgmr.msrb.gmra.mxu1 %vm297_vm0, %v439_v35 }
 0x10f   : > { %653 = vmatpush.bf16.msrb.mxu1 %v644_v33 }
 0x113   : > { %v437_v37 = vpop.f32.mrf.mxu0  ;;  %654 = vmatpush.bf16.msrb.mxu1 %v642_v36 }
 0x11e   : > { %1504 = vmatmul.msk.bf16.vlgmr.msra.gmra.mxu1 %vm297_vm0, %v1756_v13 }
 0x123   : > { %v360_v43 = vpop.f32.mrf.mxu2 }
 0x124   : > { %v361_v44 = vadd.f32 %v360_v43, %v279_v42 }
 0x126   : > { %v365_v45 = vsel %vm364_vm2, %v361_v44, -inf }
 0x127   : > { %366 = vmax.xlane.f32.xlu1 %v365_v45 }
 0x12b   : > { %v362_v46 = vpop.f32.mrf.mxu2 }
 0x12e   : > { %1508 = vmatmul.msk.bf16.vlgmr.msrb.gmra.mxu1 %vm297_vm0, %v1756_v13 }
 0x133   : > { %v495_v59 = vpop.f32.mrf.mxu2 }
 0x134   : > { %v499_v62 = vpack.c.bf16 %v495_v59, %v495_v59 }
 0x136   : > { %v506_v0 = vsel %vm504_vm3, %v499_v62, 0 }
 0x137   : > { %515 = vmatpush.bf16.msrb.mxu3 %v506_v0 }
 0x13b   : > { %v497_v61 = vpop.f32.mrf.mxu2  ;;  %612 = vmatpush.bf16.msra.mxu3 %v603_v57 }
 0x13f   : > { %613 = vmatpush.bf16.msra.mxu3 %v601_v58 }
 0x18b   : > { %v452_v47 = vpop.f32.mrf.mxu1 }
 0x18c   : > { %v453_v48 = vadd.f32 %v452_v47, %v279_v42 }
 0x18e   : > { %v456_v49 = vsel %vm364_vm2, %v453_v48, -inf }
 0x18f   : > { %457 = vmax.xlane.f32.xlu2 %v456_v49 }
 0x193   : > { %v454_v50 = vpop.f32.mrf.mxu1 }
 0x19a   : > { %v367_v2 = vpop.xlane.xlu1 %366 }
 0x19b   : > { %v555_v51 = vpop.f32.mrf.mxu1  ;;  %v368_v5 = vsub.f32 %v361_v44, %v367_v2 }
 0x19c   : > { %v559_v52 = vpack.c.bf16 %v555_v51, %v555_v51 }
 0x19d   : > { %v369_v6 = vmul.f32 1.442695, %v368_v5 }
 0x19e   : > { %1505 = vmatmul.msk.bf16.vlgmr.msra.gmra.mxu2 %vm297_vm0, %v559_v52 }
 0x1a3   : > { %v557_v53 = vpop.f32.mrf.mxu1 }
 0x1ab   : > { %v656_v54 = vpop.f32.mrf.mxu1 }
 0x1ac   : > { %v660_v55 = vpack.c.bf16 %v656_v54, %v656_v54 }
 0x1ae   : > { %1509 = vmatmul.msk.bf16.vlgmr.msrb.gmra.mxu2 %vm297_vm0, %v660_v55 }
 0x1b3   : > { %v658_v56 = vpop.f32.mrf.mxu1 }
 0x202   : > { %v458_v1 = vpop.xlane.xlu2 %457 }
 0x203   : > { %v459_v3 = vsub.f32 %v453_v48, %v458_v1 }
 0x205   : > { %v460_v4 = vmul.f32 1.442695, %v459_v3 }
 0x207   : > { %1607 = vpow2.f32 %v460_v4 }
 0x208   : > { %1609 = vpow2.f32 %v369_v6 }
 0x20d   : > { %v1608_v8 = vpop.eup %1607 }
 0x20e   : > { %v462_v9 = vsel %vm364_vm2, %v1608_v8, 0.0  ;;  %v1610_v12 = vpop.eup %1609 }
 0x20f   : > { %463 = vadd.xlane.f32.xlu0 %v462_v9  ;;  %v371_v14 = vsel %vm364_vm2, %v1610_v12, 0.0 }
 0x217   : > { %372 = vadd.xlane.f32.xlu0 %v371_v14 }
 0x221   : > { %v572_v15 = vpop.f32.mrf.mxu2 }
 0x222   : > { %v573_v16 = vadd.f32 %v572_v15, %v279_v42 }
 0x224   : > { %v576_v17 = vsel %vm364_vm2, %v573_v16, -inf }
 0x225   : > { %577 = vmax.xlane.f32.xlu2 %v576_v17 }
 0x229   : > { %v574_v18 = vpop.f32.mrf.mxu2 }
 0x231   : > { %v673_v19 = vpop.f32.mrf.mxu2 }
 0x232   : > { %v674_v20 = vadd.f32 %v673_v19, %v279_v42 }
 0x234   : > { %v677_v21 = vsel %vm364_vm2, %v674_v20, -inf }
 0x235   : > { %678 = vmax.xlane.f32.xlu2 %v677_v21 }
 0x239   : > { %v675_v22 = vpop.f32.mrf.mxu2 }
 0x282   : > { %v464_v26 = vpop.xlane.xlu0 %463 }
 0x283   : > { %1611 = vrcp.f32 %v464_v26  ;;  %v476_v32 = vand.u32 2147483648, %v464_v26  ;;  %v474_v34 = vand.u32 2147483647, %v464_v26  ;;  %vm470_vm5 = vweird.f32 %v464_v26 }
 0x285   : > { %v477_v37 = vor.u32 1.1754944e-38, %v476_v32  ;;  %vm475_vm7 = vcmp.eq.f32.partialorder %v474_v34, 8.507059e+37 }
 0x289   : > { %v1612_v28 = vpop.eup %1611 }
 0x28a   : > { %v466_v29 = vmul.f32 %v1612_v28, %v464_v26  ;;  %v373_v30 = vpop.xlane.xlu0 %372  ;;  %vm471_vm4 = vweird.f32 %v1612_v28 }
 0x28b   : > { %1613 = vrcp.f32 %v373_v30  ;;  %vm472_vm6 = vmor %vm470_vm5, %vm471_vm4  ;;  %v385_v43 = vand.u32 2147483648, %v373_v30  ;;  %v383_v45 = vand.u32 2147483647, %v373_v30  ;;  %vm379_vm9 = vweird.f32 %v373_v30 }
 0x28c   : > { %v467_v31 = vsub.f32 1.0, %v466_v29 }
 0x28d   : > { %v386_v49 = vor.u32 1.1754944e-38, %v385_v43  ;;  %vm384_vm11 = vcmp.eq.f32.partialorder %v383_v45, 8.507059e+37 }
 0x28e   : > { %v468_v33 = vmul.f32 %v1612_v28, %v467_v31 }
 0x290   : > { %v469_v35 = vadd.f32 %v1612_v28, %v468_v33 }
 0x291   : > { %v1614_v36 = vpop.eup %1613 }
 0x292   : > { %v375_v38 = vmul.f32 %v1614_v36, %v373_v30  ;;  %v473_v39 = vsel %vm472_vm6, %v1612_v28, %v469_v35  ;;  %vm380_vm8 = vweird.f32 %v1614_v36 }
 0x293   : > { %v478_v40 = vsel %vm475_vm7, %v477_v37, %v473_v39  ;;  %vm381_vm10 = vmor %vm379_vm9, %vm380_vm8 }
 0x294   : > { %v376_v41 = vsub.f32 1.0, %v375_v38  ;;  %v479_v42 = vmul.f32 %v1608_v8, %v478_v40 }
 0x296   : > { %v377_v44 = vmul.f32 %v1614_v36, %v376_v41  ;;  %v500_v46 = vpack.c.bf16 %v479_v42, %v479_v42 }
 0x298   : > { %v378_v47 = vadd.f32 %v1614_v36, %v377_v44  ;;  %1502 = vmatmul.msk.bf16.vlgmr.msrb.gmra.mxu3 %vm364_vm2, %v500_v46  ;;  %v578_v48 = vpop.xlane.xlu2 %577 }
 0x299   : > { %713 = vmatpush.bf16.msrb.mxu3 %v1789_v60  ;;  %v579_v50 = vsub.f32 %v573_v16, %v578_v48  ;;  %v1696_v48 = vmov 32.0  }
 0x29a   : > { %v382_v51 = vsel %vm381_vm10, %v1614_v36, %v378_v47 }
 0x29b   : > { %v387_v52 = vsel %vm384_vm11, %v386_v49, %v382_v51  ;;  %v580_v53 = vmul.f32 1.442695, %v579_v50  ;;  %v1519_v49 = vld [vmem:[#allocation2 + $0x40] sm:$0xf]  ;;  %v1571_v50 = vld [vmem:[#allocation2 + $0x58] sm:$0xf0] }
 0x29c   : > { %v388_v54 = vmul.f32 %v1610_v12, %v387_v52  ;;  %v1520_v51 = vor.u32 %v1571_v50, %v1519_v49 }
 0x29d   : > { %1615 = vpow2.f32 %v580_v53  ;;  %714 = vmatpush.bf16.msrb.mxu3 %v1791_v63 }
 0x29e   : > { %v419_v55 = vpack.c.bf16 %v388_v54, %v388_v54  ;;  %917 = vrot.lane.b32.xlu1 %v1520_v51, %s1692_s6  ;;  %833 = vmatpush.bf16.msra.mxu2 %v1520_v51 }
 0x2a0   : > { %1503 = vmatmul.msk.bf16.vlgmr.msra.gmra.mxu0 %vm364_vm2, %v419_v55 }
 0x2a3   : > { %v1616_v56 = vpop.eup %1615 }
 0x2a4   : > { %v582_v57 = vsel %vm364_vm2, %v1616_v56, 0.0 }
 0x2a5   : > { %583 = vadd.xlane.f32.xlu2 %v582_v57  ;;  %v1570_v57 = vld [vmem:[#allocation2 + $0x20] sm:$0xf0] }
 0x2a6   : > { %1137 = vrot.lane.b32.xlu1 %v1520_v51, %s1694_s8 }
 0x2a8   : > { %1506 = vmatmul.msk.bf16.vlgmr.msra.gmra.mxu3 %vm297_vm0, %v1756_v13  ;;  %v679_v58 = vpop.xlane.xlu2 %678 }
 0x2a9   : > { %v680_v59 = vsub.f32 %v674_v20, %v679_v58 }
 0x2ab   : > { %v681_v60 = vmul.f32 1.442695, %v680_v59 }
 0x2ad   : > { %1617 = vpow2.f32 %v681_v60 }
 0x2b3   : > { %v1618_v61 = vpop.eup %1617 }
 0x2b4   : > { %v683_v62 = vsel %vm364_vm2, %v1618_v61, 0.0 }
 0x2b5   : > { %684 = vadd.xlane.f32.xlu0 %v683_v62 }
 0x2b8   : > { %1510 = vmatmul.msk.bf16.vlgmr.msrb.gmra.mxu3 %vm297_vm0, %v1756_v13 }
 0x2c9   : > { %785 = vrot.lane.b32.xlu0 %v1748_v10, %s1692_s6 }
 0x318   : > { %v584_v63 = vpop.xlane.xlu2 %583 }
 0x319   : > { %1619 = vrcp.f32 %v584_v63  ;;  %v596_v6 = vand.u32 2147483648, %v584_v63  ;;  %v594_v12 = vand.u32 2147483647, %v584_v63  ;;  %vm590_vm13 = vweird.f32 %v584_v63 }
 0x31b   : > { %v517_v0 = vpop.f32.mrf.mxu3  ;;  %v597_v13 = vor.u32 1.1754944e-38, %v596_v6  ;;  %vm595_vm15 = vcmp.eq.f32.partialorder %v594_v12, 8.507059e+37  ;;  %v1529_v12 = vld [vmem:[#allocation2 + $0x44] sm:$0xf] }
 0x31d   : > { %v536_v1 = vpop.f32.mrf.mxu0 }
 0x31e   : > { %v537_v2 = vadd.f32 %v536_v1, %v517_v0 }
 0x31f   : > { %v1620_v3 = vpop.eup %1619 }
 0x320   : > { %v586_v4 = vmul.f32 %v1620_v3, %v584_v63  ;;  %vm591_vm12 = vweird.f32 %v1620_v3 }
 0x321   : > { %vm592_vm14 = vmor %vm590_vm13, %vm591_vm12 }
 0x322   : > { %v587_v5 = vsub.f32 1.0, %v586_v4 }
 0x323   : > { %v519_v8 = vpop.f32.mrf.mxu3 }
 0x324   : > { %v588_v9 = vmul.f32 %v1620_v3, %v587_v5  ;;  %v918_v5 = vpop.permute.xlu1 %917  ;;  %v1525_v8 = vld [vmem:[#allocation2 + $0xc] sm:$0xf] }
 0x325   : > { %v538_v14 = vpop.f32.mrf.mxu0 }
 0x326   : > { %v589_v15 = vadd.f32 %v1620_v3, %v588_v9  ;;  %v1572_v9 = vld [vmem:[#allocation2 + $0x24] sm:$0xf0] }
 0x328   : > { %v593_v16 = vsel %vm592_vm14, %v1620_v3, %v589_v15  ;;  %v685_v10 = vpop.xlane.xlu0 %684  ;;  %v273_v3 = vld [vmem:[%s262_s13] sm:$0xff]  ;;  %v1526_v15 = vor.u32 %v1572_v9, %v1525_v8 }
 0x329   : > { %v598_v17 = vsel %vm595_vm15, %v597_v13, %v593_v16  ;;  %1621 = vrcp.f32 %v685_v10  ;;  %v697_v26 = vand.u32 2147483648, %v685_v10  ;;  %v695_v29 = vand.u32 2147483647, %v685_v10  ;;  %v1573_v13 = vld [vmem:[#allocation2 + $0x5c] sm:$0xf0] }
 0x32a   : > { %v599_v19 = vmul.f32 %v1616_v56, %v598_v17  ;;  %vm691_vm4 = vweird.f32 %v685_v10  ;;  %1623 = vrcp.f32 %v1696_v48  ;;  %v1515_v56 = vld [vmem:[#allocation2 + $0x8] sm:$0xf]  ;;  %v1840_v4 = vpack.c.bf16 %v273_v3, %v273_v3  ;;  %975 = vrot.lane.b32.xlu1 %v1526_v15, %s1692_s6 }
 0x32b   : > { %v615_v18 = vpop.f32.mrf.mxu3  ;;  %v698_v31 = vor.u32 1.1754944e-38, %v697_v26  ;;  %vm696_vm6 = vcmp.eq.f32.partialorder %v695_v29, 8.507059e+37  ;;  %v1516_v58 = vor.u32 %v1570_v57, %v1515_v56 }
 0x32c   : > { %v619_v20 = vpack.c.bf16 %v615_v18, %v615_v18  ;;  %v620_v24 = vpack.c.bf16 %v599_v19, %v599_v19 }
 0x32d   : > { %834 = vmatpush.bf16.msra.mxu2 %v1516_v58 }
 0x32e   : > { %v625_v21 = vsel %vm504_vm3, %v619_v20, 0 }
 0x32f   : > { %v1622_v22 = vpop.eup %1621  ;;  %634 = vmatpush.bf16.msrb.mxu0 %v625_v21 }
 0x330   : > { %v687_v23 = vmul.f32 %v1622_v22, %v685_v10  ;;  %vm692_vm1 = vweird.f32 %v1622_v22  ;;  %v1624_v52 = vpop.eup %1623  ;;  %v1530_v10 = vor.u32 %v1573_v13, %v1529_v12 }
 0x331   : > { %vm693_vm5 = vmor %vm691_vm4, %vm692_vm1  ;;  %v747_v53 = vmul.f32 32.0, %v1624_v52  ;;  %vm751_vm7 = vweird.f32 %v1624_v52 }
 0x332   : > { %v688_v25 = vsub.f32 1.0, %v687_v23  ;;  %1507 = vmatmul.msk.bf16.vlgmr.msrb.gmra.mxu0 %vm364_vm2, %v620_v24  ;;  %1096 = vrot.lane.b32.xlu1 %v1530_v10, %s1693_s7 }
 0x333   : > { %v617_v27 = vpop.f32.mrf.mxu3  ;;  %v748_v54 = vsub.f32 1.0, %v747_v53 }
 0x334   : > { %v689_v28 = vmul.f32 %v1622_v22, %v688_v25 }
 0x336   : > { %v690_v30 = vadd.f32 %v1622_v22, %v689_v28 }
 0x338   : > { %v694_v32 = vsel %vm693_vm5, %v1622_v22, %v690_v30 }
 0x339   : > { %v699_v33 = vsel %vm696_vm6, %v698_v31, %v694_v32 }
 0x33a   : > { %v700_v35 = vmul.f32 %v1618_v61, %v699_v33  ;;  %1094 = vrot.lane.b32.xlu1 %v1526_v15, %s1693_s7 }
 0x33b   : > { %v716_v34 = vpop.f32.mrf.mxu3  ;;  %v786_v1 = vpop.permute.xlu0 %785 }
 0x33c   : > { %v720_v36 = vpack.c.bf16 %v716_v34, %v716_v34  ;;  %v721_v38 = vpack.c.bf16 %v700_v35, %v700_v35  ;;  %v1138_v35 = vpop.permute.xlu1 %1137 }
 0x33e   : > { %v726_v37 = vsel %vm504_vm3, %v720_v36, 0 }
 0x33f   : > { %735 = vmatpush.bf16.msra.mxu0 %v726_v37 }
 0x342   : > { %1511 = vmatmul.msk.bf16.vlgmr.msra.gmra.mxu0 %vm364_vm2, %v721_v38  ;;  %1197 = vrot.lane.b32.xlu1 %v1530_v10, %s1694_s8 }
 0x343   : > { %v718_v39 = vpop.f32.mrf.mxu3  ;;  %906 = vmatpush.bf16.msrb.mxu0 %v1530_v10 }
 0x347   : > { %907 = vmatpush.bf16.msrb.mxu0 %v1526_v15 }
 0x34a   : > { %1195 = vrot.lane.b32.xlu1 %v1526_v15, %s1694_s8 }
 0x352   : > { %1531 = vmatmul.msk.bf16.vlgmr.msrb.gmra.mxu0 %vm297_vm0, %v1840_v4 }
 0x39c   : > { %v976_v37 = vpop.permute.xlu1 %975 }
 0x3af   : > { %v636_v40 = vpop.f32.mrf.mxu0 }
 0x3b0   : > { %v640_v42 = vadd.f32 %v636_v40, %v537_v2  ;;  %v1830_v2 = vld [vmem:[%s1931_s4 + $0x1] ss:$0 sm:$0xff] }
 0x3b7   : > { %v638_v41 = vpop.f32.mrf.mxu0 }
 0x3bf   : > { %v737_v43 = vpop.f32.mrf.mxu0 }
 0x3c0   : > { %v741_v44 = vadd.f32 %v737_v43, %v640_v42 }
 0x3c2   : > { %v742_v45 = vadd.f32 %v741_v44, %v1750_v11  ;;  %v749_v11 = vmul.f32 %v1624_v52, %v748_v54 }
 0x3c4   : > { %v743_v46 = vsel %vm297_vm0, %v742_v45, 0.0  ;;  %v750_v55 = vadd.f32 %v1624_v52, %v749_v11 }
 0x3c5   : > { %744 = vadd.xlane.f32.xlu2 %v743_v46  ;;  %v781_v46 = vld [vmem:[%s266_s16] sm:$0xff] }
 0x3c7   : > { %v739_v47 = vpop.f32.mrf.mxu0 }
 0x3c8   : > { %v782_v47 = vmul.f32 -1e+30, %v781_v46 }
 0x3dd   : > { %787 = vrot.lane.b32.xlu2 %v1744_v7, %s1692_s6  ;;  %v1821_v7 = vsel %vm751_vm7, %v1624_v52, %v750_v55 }
 0x3e5   : > { %915 = vrot.lane.b32.xlu2 %v1516_v58, %s1692_s6 }
 0x3ed   : > { %1034 = vrot.lane.b32.xlu2 %v1516_v58, %s1693_s7 }
 0x3f5   : > { %977 = vrot.lane.b32.xlu2 %v1530_v10, %s1692_s6 }
 0x438   : > { %v745_v59 = vpop.xlane.xlu2 %744 }
 0x439   : > { %v753_v60 = vmul.f32 %v1821_v7, %v745_v59 }
 0x43b   : > { %v754_v61 = vsub.f32 %v742_v45, %v753_v60 }
 0x43d   : > { %v755_v62 = vmul.f32 %v754_v61, %v754_v61 }
 0x43f   : > { %v756_v63 = vsel %vm297_vm0, %v755_v62, 0.0  ;;  %v1097_v62 = vpop.permute.xlu1 %1096 }
 0x440   : > { %757 = vadd.xlane.f32.xlu0 %v756_v63  ;;  %v788_v0 = vpop.permute.xlu2 %787 }
 0x441   : > { %800 = vmatpush.bf16.msra.mxu1 %v788_v0 }
 0x445   : > { %801 = vmatpush.bf16.msra.mxu1 %v786_v1 }
 0x447   : > { %v1095_v3 = vpop.permute.xlu1 %1094 }
 0x448   : > { %1512 = vmatmul.msk.bf16.vlgmr.msra.gmra.mxu1 %vm297_vm0, %v1840_v4  ;;  %v916_v6 = vpop.permute.xlu2 %915 }
 0x449   : > { %927 = vmatpush.bf16.msrb.mxu1 %v918_v5 }
 0x44d   : > { %928 = vmatpush.bf16.msrb.mxu1 %v916_v6 }
 0x44f   : > { %v1198_v8 = vpop.permute.xlu1 %1197 }
 0x450   : > { %v1035_v34 = vpop.permute.xlu2 %1034 }
 0x454   : > { %777 = vrot.lane.b32.xlu0 %v1830_v2, %s1692_s6 }
 0x458   : > { %v978_v36 = vpop.permute.xlu2 %977 }
 0x45c   : > { %1036 = vrot.lane.b32.xlu0 %v1520_v51, %s1693_s7 }
 0x464   : > { %1135 = vrot.lane.b32.xlu0 %v1516_v58, %s1694_s8 }
 0x4b3   : > { %v758_v14 = vpop.xlane.xlu0 %757 }
 0x4b4   : > { %v759_v16 = vmul.f32 %v758_v14, %v1821_v7  ;;  %v1196_v14 = vpop.permute.xlu1 %1195 }
 0x4b6   : > { %v760_v17 = vadd.f32 1e-05, %v759_v16 }
 0x4b8   : > { %1625 = vrsqrt.f32 %v760_v17  ;;  %vm767_vm9 = vweird.f32 %v760_v17 }
 0x4be   : > { %v1626_v18 = vpop.eup %1625 }
 0x4bf   : > { %v762_v19 = vmul.f32 %v1626_v18, %v760_v17  ;;  %vm768_vm8 = vweird.f32 %v1626_v18 }
 0x4c0   : > { %vm769_vm10 = vmor %vm767_vm9, %vm768_vm8 }
 0x4c1   : > { %v763_v20 = vmul.f32 %v1626_v18, %v762_v19 }
 0x4c3   : > { %v764_v21 = vmul.f32 0.5, %v763_v20 }
 0x4c5   : > { %v765_v22 = vsub.f32 1.5, %v764_v21  ;;  %v803_v30 = vpop.f32.mrf.mxu1 }
 0x4c6   : > { %v778_v26 = vpop.permute.xlu0 %777  ;;  %v807_v31 = vpack.c.bf16 %v803_v30, %v803_v30 }
 0x4c7   : > { %v766_v23 = vmul.f32 %v1626_v18, %v765_v22 }
 0x4c8   : > { %v845_v32 = vsel %vm297_vm0, %v807_v31, 0 }
 0x4c9   : > { %v770_v24 = vsel %vm769_vm10, %v1626_v18, %v766_v23  ;;  %854 = vmatpush.bf16.xpose.msra.mxu3 %v845_v32  ;;  %945 = vmatpush.bf16.xpose.msrb.mxu2 %v845_v32 }
 0x4ca   : > { %v771_v25 = vmul.f32 %v770_v24, %v754_v61 }
 0x4cc   : > { %v776_v27 = vmul.f32 %v1830_v2, %v771_v25 }
 0x4cd   : > { %v805_v33 = vpop.f32.mrf.mxu1 }
 0x4ce   : > { %v1853_v28 = vadd.f32 %v778_v26, %v776_v27  ;;  %v1037_v38 = vpop.permute.xlu0 %1036 }
 0x4d0   : > { %v783_v29 = vpack.c.bf16 %v1853_v28, %v1853_v28 }
 0x4d1   : > { %987 = vmatpush.bf16.msrb.mxu3 %v978_v36  ;;  %v909_v36 = vpop.f32.mrf.mxu0 }
 0x4d2   : > { %1521 = vmatmul.msk.bf16.vlgmr.msra.gmra.mxu2 %vm297_vm0, %v783_v29  ;;  %1532 = vmatmul.msk.bf16.vlgmr.msrb.gmra.mxu1 %vm297_vm0, %v783_v29 }
 0x4d3   : > { %1046 = vmatpush.bf16.msra.mxu2 %v1037_v38  ;;  %v913_v38 = vpack.c.bf16 %v909_v36, %v909_v36 }
 0x4d5   : > { %988 = vmatpush.bf16.msrb.mxu3 %v976_v37 }
 0x4d6   : > { %v1136_v41 = vpop.permute.xlu0 %1135 }
 0x4d7   : > { %1047 = vmatpush.bf16.msra.mxu2 %v1035_v34 }
 0x54f   : > { %v930_v39 = vpop.f32.mrf.mxu1 }
 0x550   : > { %v934_v40 = vpack.c.bf16 %v930_v39, %v930_v39 }
 0x552   : > { %1533 = vmatmul.msk.bf16.vlgmr.msrb.gmra.mxu2 %vm297_vm0, %v934_v40 }
 0x553   : > { %1147 = vmatpush.bf16.msrb.mxu2 %v1138_v35 }
 0x555   : > { %v836_v42 = vpop.f32.mrf.mxu2 }
 0x556   : > { %v840_v43 = vpack.c.bf16 %v836_v42, %v836_v42 }
 0x557   : > { %v932_v44 = vpop.f32.mrf.mxu1  ;;  %1148 = vmatpush.bf16.msrb.mxu2 %v1136_v41  ;;  %v1019_v41 = vsel %vm504_vm3, %v913_v38, 0 }
 0x558   : > { %1522 = vmatmul.msk.bf16.vlgmr.msra.gmra.mxu3 %vm297_vm0, %v840_v43  ;;  %1028 = vmatpush.bf16.msra.mxu1 %v1019_v41 }
 0x559   : > { %1064 = vmatpush.bf16.xpose.msra.mxu3 %v845_v32 }
 0x55d   : > { %v838_v45 = vpop.f32.mrf.mxu2 }
 0x55e   : > { %v911_v45 = vpop.f32.mrf.mxu0 }
 0x562   : > { %1537 = vmatmul.msk.bf16.vlgmr.msra.gmra.mxu2 %vm297_vm0, %v783_v29 }
 0x568   : > { %1534 = vmatmul.msk.bf16.vlgmr.msrb.gmra.mxu3 %vm297_vm0, %v1840_v4 }
 0x569   : > { %1165 = vmatpush.bf16.xpose.msrb.mxu3 %v845_v32 }
 0x572   : > { %1541 = vmatmul.msk.bf16.vlgmr.msrb.gmra.mxu2 %vm297_vm0, %v783_v29 }
 0x5d5   : > { %v947_v48 = vpop.f32.mrf.mxu2 }
 0x5d6   : > { %v948_v49 = vadd.f32 %v947_v48, %v782_v47 }
 0x5d8   : > { %v951_v50 = vsel %vm364_vm2, %v948_v49, -inf }
 0x5d9   : > { %952 = vmax.xlane.f32.xlu0 %v951_v50 }
 0x5db   : > { %v856_v51 = vpop.f32.mrf.mxu3 }
 0x5dc   : > { %v857_v52 = vadd.f32 %v856_v51, %v782_v47 }
 0x5dd   : > { %v949_v53 = vpop.f32.mrf.mxu2 }
 0x5de   : > { %v860_v54 = vsel %vm364_vm2, %v857_v52, -inf }
 0x5df   : > { %861 = vmax.xlane.f32.xlu1 %v860_v54 }
 0x5e3   : > { %v858_v11 = vpop.f32.mrf.mxu3 }
 0x5e5   : > { %v1049_v55 = vpop.f32.mrf.mxu2 }
 0x5e6   : > { %v1053_v56 = vpack.c.bf16 %v1049_v55, %v1049_v55 }
 0x5e8   : > { %1538 = vmatmul.msk.bf16.vlgmr.msra.gmra.mxu3 %vm297_vm0, %v1053_v56 }
 0x5eb   : > { %v990_v61 = vpop.f32.mrf.mxu3 }
 0x5ec   : > { %v994_v63 = vpack.c.bf16 %v990_v61, %v990_v61 }
 0x5ed   : > { %v1051_v57 = vpop.f32.mrf.mxu2 }
 0x5ee   : > { %v1000_v0 = vsel %vm504_vm3, %v994_v63, 0 }
 0x5ef   : > { %1009 = vmatpush.bf16.msra.mxu0 %v1000_v0 }
 0x5f3   : > { %v992_v1 = vpop.f32.mrf.mxu3  ;;  %1106 = vmatpush.bf16.msrb.mxu0 %v1097_v62 }
 0x5f5   : > { %v1150_v58 = vpop.f32.mrf.mxu2 }
 0x5f6   : > { %v1154_v59 = vpack.c.bf16 %v1150_v58, %v1150_v58 }
 0x5f7   : > { %1107 = vmatpush.bf16.msrb.mxu0 %v1095_v3 }
 0x5f8   : > { %1542 = vmatmul.msk.bf16.vlgmr.msrb.gmra.mxu3 %vm297_vm0, %v1154_v59 }
 0x5fd   : > { %v1152_v60 = vpop.f32.mrf.mxu2 }
 0x64c   : > { %v953_v5 = vpop.xlane.xlu0 %952 }
 0x64d   : > { %v954_v6 = vsub.f32 %v948_v49, %v953_v5 }
 0x64f   : > { %v955_v9 = vmul.f32 1.442695, %v954_v6 }
 0x651   : > { %1627 = vpow2.f32 %v955_v9 }
 0x652   : > { %v862_v13 = vpop.xlane.xlu1 %861 }
 0x653   : > { %v863_v16 = vsub.f32 %v857_v52, %v862_v13 }
 0x655   : > { %v864_v10 = vmul.f32 1.442695, %v863_v16 }
 0x657   : > { %v1628_v12 = vpop.eup %1627  ;;  %1629 = vpow2.f32 %v864_v10 }
 0x658   : > { %v957_v15 = vsel %vm364_vm2, %v1628_v12, 0.0 }
 0x659   : > { %958 = vadd.xlane.f32.xlu2 %v957_v15 }
 0x65d   : > { %v1878_v20 = vpop.eup %1629 }
 0x65e   : > { %v866_v22 = vsel %vm364_vm2, %v1878_v20, 0.0 }
 0x66b   : > { %v1066_v17 = vpop.f32.mrf.mxu3 }
 0x66c   : > { %v1067_v18 = vadd.f32 %v1066_v17, %v782_v47 }
 0x66e   : > { %v1070_v19 = vsel %vm364_vm2, %v1067_v18, -inf }
 0x66f   : > { %1071 = vmax.xlane.f32.xlu0 %v1070_v19 }
 0x673   : > { %v1068_v21 = vpop.f32.mrf.mxu3 }
 0x677   : > { %867 = vadd.xlane.f32.xlu0 %v866_v22 }
 0x67b   : > { %v1167_v23 = vpop.f32.mrf.mxu3 }
 0x67c   : > { %v1168_v24 = vadd.f32 %v1167_v23, %v782_v47 }
 0x67e   : > { %v1171_v25 = vsel %vm364_vm2, %v1168_v24, -inf }
 0x67f   : > { %1172 = vmax.xlane.f32.xlu2 %v1171_v25 }
 0x683   : > { %v1169_v26 = vpop.f32.mrf.mxu3 }
 0x6cc   : > { %v959_v27 = vpop.xlane.xlu2 %958 }
 0x6cd   : > { %1631 = vrcp.f32 %v959_v27  ;;  %v971_v32 = vand.u32 2147483648, %v959_v27  ;;  %v969_v34 = vand.u32 2147483647, %v959_v27  ;;  %vm965_vm12 = vweird.f32 %v959_v27 }
 0x6cf   : > { %v972_v37 = vor.u32 1.1754944e-38, %v971_v32  ;;  %vm970_vm14 = vcmp.eq.f32.partialorder %v969_v34, 8.507059e+37 }
 0x6d3   : > { %v1632_v29 = vpop.eup %1631 }
 0x6d4   : > { %v961_v30 = vmul.f32 %v1632_v29, %v959_v27  ;;  %vm966_vm11 = vweird.f32 %v1632_v29 }
 0x6d5   : > { %vm967_vm13 = vmor %vm965_vm12, %vm966_vm11 }
 0x6d6   : > { %v962_v31 = vsub.f32 1.0, %v961_v30 }
 0x6d8   : > { %v963_v33 = vmul.f32 %v1632_v29, %v962_v31 }
 0x6da   : > { %v964_v35 = vadd.f32 %v1632_v29, %v963_v33 }
 0x6dc   : > { %v968_v39 = vsel %vm967_vm13, %v1632_v29, %v964_v35 }
 0x6dd   : > { %v973_v40 = vsel %vm970_vm14, %v972_v37, %v968_v39 }
 0x6de   : > { %v974_v42 = vmul.f32 %v1628_v12, %v973_v40 }
 0x6e0   : > { %v995_v43 = vpack.c.bf16 %v974_v42, %v974_v42 }
 0x6e2   : > { %v1072_v44 = vpop.xlane.xlu0 %1071  ;;  %1535 = vmatmul.msk.bf16.vlgmr.msra.gmra.mxu0 %vm364_vm2, %v995_v43 }
 0x6e3   : > { %v1073_v46 = vsub.f32 %v1067_v18, %v1072_v44  ;;  %1207 = vmatpush.bf16.msra.mxu0 %v1198_v8 }
 0x6e5   : > { %v1074_v47 = vmul.f32 1.442695, %v1073_v46 }
 0x6e7   : > { %1633 = vpow2.f32 %v1074_v47  ;;  %1208 = vmatpush.bf16.msra.mxu0 %v1196_v14 }
 0x6ea   : > { %v868_v48 = vpop.xlane.xlu0 %867 }
 0x6eb   : > { %1635 = vrcp.f32 %v868_v48  ;;  %v880_v55 = vand.u32 2147483648, %v868_v48  ;;  %v878_v58 = vand.u32 2147483647, %v868_v48  ;;  %vm874_vm1 = vweird.f32 %v868_v48 }
 0x6ed   : > { %v1634_v49 = vpop.eup %1633  ;;  %v881_v60 = vor.u32 1.1754944e-38, %v880_v55  ;;  %vm879_vm5 = vcmp.eq.f32.partialorder %v878_v58, 8.507059e+37  ;;  %v1551_v58 = vld [vmem:[#allocation2 + $0x48] sm:$0xf] }
 0x6ee   : > { %v1076_v50 = vsel %vm364_vm2, %v1634_v49, 0.0 }
 0x6ef   : > { %1077 = vadd.xlane.f32.xlu2 %v1076_v50 }
 0x6f1   : > { %v1636_v51 = vpop.eup %1635 }
 0x6f2   : > { %v870_v52 = vmul.f32 %v1636_v51, %v868_v48  ;;  %1539 = vmatmul.msk.bf16.vlgmr.msrb.gmra.mxu0 %vm297_vm0, %v1840_v4  ;;  %v1173_v53 = vpop.xlane.xlu2 %1172  ;;  %vm875_vm15 = vweird.f32 %v1636_v51 }
 0x6f3   : > { %v1174_v54 = vsub.f32 %v1168_v24, %v1173_v53  ;;  %vm876_vm4 = vmor %vm874_vm1, %vm875_vm15 }
 0x6f4   : > { %v871_v11 = vsub.f32 1.0, %v870_v52 }
 0x6f5   : > { %v1175_v56 = vmul.f32 1.442695, %v1174_v54 }
 0x6f6   : > { %v872_v57 = vmul.f32 %v1636_v51, %v871_v11 }
 0x6f7   : > { %1637 = vpow2.f32 %v1175_v56 }
 0x6f8   : > { %v873_v59 = vadd.f32 %v1636_v51, %v872_v57 }
 0x6fa   : > { %v877_v61 = vsel %vm876_vm4, %v1636_v51, %v873_v59 }
 0x6fb   : > { %v882_v62 = vsel %vm879_vm5, %v881_v60, %v877_v61  ;;  %v1547_v60 = vld [vmem:[#allocation2 + $0x10] sm:$0xf]  ;;  %v1574_v61 = vld [vmem:[#allocation2 + $0x28] sm:$0xf0] }
 0x6fc   : > { %v883_v63 = vmul.f32 %v1878_v20, %v882_v62  ;;  %v1548_v62 = vor.u32 %v1574_v61, %v1547_v60 }
 0x6fd   : > { %v1638_v0 = vpop.eup %1637 }
 0x6fe   : > { %v1177_v1 = vsel %vm364_vm2, %v1638_v0, 0.0  ;;  %v914_v3 = vpack.c.bf16 %v883_v63, %v883_v63  ;;  %v1560_v63 = vld [vmem:[#allocation2 + $0x4c] sm:$0xf] }
 0x6ff   : > { %1178 = vadd.xlane.f32.xlu0 %v1177_v1 }
 0x700   : > { %1536 = vmatmul.msk.bf16.vlgmr.msra.gmra.mxu1 %vm364_vm2, %v914_v3 }
 0x702   : > { %1543 = vmatmul.msk.bf16.vlgmr.msra.gmra.mxu0 %vm297_vm0, %v1840_v4 }
 0x75f   : > { %v1011_v5 = vpop.f32.mrf.mxu0 }
 0x762   : > { %v1078_v6 = vpop.xlane.xlu2 %1077 }
 0x763   : > { %1639 = vrcp.f32 %v1078_v6  ;;  %v1090_v15 = vand.u32 2147483648, %v1078_v6  ;;  %v1088_v16 = vand.u32 2147483647, %v1078_v6  ;;  %vm1084_vm7 = vweird.f32 %v1078_v6 }
 0x765   : > { %v1091_v19 = vor.u32 1.1754944e-38, %v1090_v15  ;;  %vm1089_vm9 = vcmp.eq.f32.partialorder %v1088_v16, 8.507059e+37 }
 0x767   : > { %v1013_v8 = vpop.f32.mrf.mxu0 }
 0x769   : > { %v1640_v9 = vpop.eup %1639 }
 0x76a   : > { %v1080_v12 = vmul.f32 %v1640_v9, %v1078_v6  ;;  %vm1085_vm6 = vweird.f32 %v1640_v9 }
 0x76b   : > { %vm1086_vm8 = vmor %vm1084_vm7, %vm1085_vm6 }
 0x76c   : > { %v1081_v14 = vsub.f32 1.0, %v1080_v12 }
 0x76e   : > { %v1082_v13 = vmul.f32 %v1640_v9, %v1081_v14 }
 0x76f   : > { %v1109_v10 = vpop.f32.mrf.mxu0 }
 0x770   : > { %v1083_v17 = vadd.f32 %v1640_v9, %v1082_v13  ;;  %v1113_v18 = vpack.c.bf16 %v1109_v10, %v1109_v10 }
 0x772   : > { %v1087_v20 = vsel %vm1086_vm8, %v1640_v9, %v1083_v17  ;;  %v1119_v4 = vsel %vm504_vm3, %v1113_v18, 0  ;;  %v1179_v21 = vpop.xlane.xlu0 %1178 }
 0x773   : > { %v1092_v22 = vsel %vm1089_vm9, %v1091_v19, %v1087_v20  ;;  %1641 = vrcp.f32 %v1179_v21  ;;  %1128 = vmatpush.bf16.msrb.mxu1 %v1119_v4  ;;  %v1191_v30 = vand.u32 2147483648, %v1179_v21  ;;  %v1189_v33 = vand.u32 2147483647, %v1179_v21  ;;  %v1556_v4 = vld [vmem:[#allocation2 + $0x14] sm:$0xf] }
 0x774   : > { %v1093_v23 = vmul.f32 %v1634_v49, %v1092_v22  ;;  %vm1185_vm11 = vweird.f32 %v1179_v21 }
 0x775   : > { %v1192_v38 = vor.u32 1.1754944e-38, %v1191_v30  ;;  %vm1190_vm13 = vcmp.eq.f32.partialorder %v1189_v33, 8.507059e+37 }
 0x776   : > { %v1114_v24 = vpack.c.bf16 %v1093_v23, %v1093_v23  ;;  %v1606_v23 = vld [vmem:[%s1931_s4 + $0x2] ss:$0 sm:$0xff] }
 0x777   : > { %v1111_v25 = vpop.f32.mrf.mxu0  ;;  %1325 = vrot.lane.b32.xlu1 %v1606_v23, %s1693_s7 }
 0x778   : > { %1540 = vmatmul.msk.bf16.vlgmr.msrb.gmra.mxu1 %vm364_vm2, %v1114_v24  ;;  %v1605_v24 = vld [vmem:[%s1931_s4] ss:$0 sm:$0xff] }
 0x779   : > { %v1642_v26 = vpop.eup %1641 }
 0x77a   : > { %v1181_v27 = vmul.f32 %v1642_v26, %v1179_v21  ;;  %vm1186_vm10 = vweird.f32 %v1642_v26  ;;  %v1576_v21 = vld [vmem:[#allocation2 + $0x2c] sm:$0xf0] }
 0x77b   : > { %vm1187_vm12 = vmor %vm1185_vm11, %vm1186_vm10  ;;  %v1557_v22 = vor.u32 %v1576_v21, %v1556_v4 }
 0x77c   : > { %v1182_v29 = vsub.f32 1.0, %v1181_v27 }
 0x77d   : > { %v1030_v31 = vpop.f32.mrf.mxu1 }
 0x77e   : > { %v1183_v32 = vmul.f32 %v1642_v26, %v1182_v29  ;;  %v1031_v34 = vadd.f32 %v1030_v31, %v1011_v5 }
 0x77f   : > { %v1210_v35 = vpop.f32.mrf.mxu0  ;;  %1366 = vrot.lane.b32.xlu1 %v1606_v23, %s1692_s6 }
 0x780   : > { %v1184_v36 = vadd.f32 %v1642_v26, %v1183_v32  ;;  %v1214_v37 = vpack.c.bf16 %v1210_v35, %v1210_v35 }
 0x782   : > { %v1188_v39 = vsel %vm1187_vm12, %v1642_v26, %v1184_v36  ;;  %v1220_v40 = vsel %vm504_vm3, %v1214_v37, 0 }
 0x783   : > { %v1193_v41 = vsel %vm1190_vm13, %v1192_v38, %v1188_v39  ;;  %1229 = vmatpush.bf16.msra.mxu1 %v1220_v40 }
 0x784   : > { %v1194_v42 = vmul.f32 %v1638_v0, %v1193_v41  ;;  %v1577_v0 = vld [vmem:[#allocation2 + $0x64] sm:$0xf0] }
 0x785   : > { %v1032_v43 = vpop.f32.mrf.mxu1  ;;  %v1561_v3 = vor.u32 %v1577_v0, %v1560_v63 }
 0x786   : > { %v1215_v44 = vpack.c.bf16 %v1194_v42, %v1194_v42 }
 0x787   : > { %v1212_v45 = vpop.f32.mrf.mxu0  ;;  %1334 = vmatpush.bf16.xpose.msra.mxu3 %v1561_v3 }
 0x788   : > { %1544 = vmatmul.msk.bf16.vlgmr.msra.gmra.mxu1 %vm364_vm2, %v1215_v44 }
 0x78f   : > { %1335 = vmatpush.bf16.xpose.msra.mxu3 %v1557_v22 }
 0x7e9   : > { %v1326_v31 = vpop.permute.xlu1 %1325 }
 0x7f5   : > { %v1130_v46 = vpop.f32.mrf.mxu1 }
 0x7f6   : > { %v1134_v48 = vadd.f32 %v1130_v46, %v1031_v34 }
 0x7fd   : > { %v1132_v47 = vpop.f32.mrf.mxu1 }
 0x805   : > { %v1231_v49 = vpop.f32.mrf.mxu1 }
 0x806   : > { %v1235_v50 = vadd.f32 %v1231_v49, %v1134_v48 }
 0x808   : > { %v1236_v51 = vadd.f32 %v1235_v50, %v1853_v28  ;;  %v1575_v28 = vld [vmem:[#allocation2 + $0x60] sm:$0xf0] }
 0x809   : > { %v1552_v59 = vor.u32 %v1575_v28, %v1551_v58 }
 0x80a   : > { %v1237_v52 = vsel %vm297_vm0, %v1236_v51, 0.0 }
 0x80b   : > { %1238 = vadd.xlane.f32.xlu2 %v1237_v52  ;;  %1297 = vmatpush.bf16.msra.mxu2 %v1552_v59 }
 0x80d   : > { %v1233_v53 = vpop.f32.mrf.mxu1 }
 0x80e   : > { %v1367_v53 = vpop.permute.xlu1 %1366 }
 0x80f   : > { %1298 = vmatpush.bf16.msra.mxu2 %v1548_v62 }
 0x823   : > { %1259 = vrot.lane.b32.xlu2 %v1830_v2, %s1693_s7 }
 0x87e   : > { %v1239_v54 = vpop.xlane.xlu2 %1238 }
 0x87f   : > { %v1240_v11 = vmul.f32 %v1239_v54, %v1821_v7 }
 0x881   : > { %v1241_v55 = vsub.f32 %v1236_v51, %v1240_v11 }
 0x883   : > { %v1242_v56 = vmul.f32 %v1241_v55, %v1241_v55 }
 0x885   : > { %v1243_v57 = vsel %vm297_vm0, %v1242_v56, 0.0 }
 0x886   : > { %1244 = vadd.xlane.f32.xlu0 %v1243_v57  ;;  %v1260_v16 = vpop.permute.xlu2 %1259 }
 0x89a   : > { %1263 = vrot.lane.b32.xlu0 %v1830_v2, %s1694_s8 }
 0x8f9   : > { %v1245_v1 = vpop.xlane.xlu0 %1244 }
 0x8fa   : > { %v1246_v5 = vmul.f32 %v1245_v1, %v1821_v7 }
 0x8fc   : > { %v1247_v6 = vadd.f32 1e-05, %v1246_v5 }
 0x8fe   : > { %1643 = vrsqrt.f32 %v1247_v6  ;;  %vm1254_vm3 = vweird.f32 %v1247_v6 }
 0x904   : > { %v1644_v8 = vpop.eup %1643 }
 0x905   : > { %v1249_v9 = vmul.f32 %v1644_v8, %v1247_v6  ;;  %vm1255_vm2 = vweird.f32 %v1644_v8 }
 0x906   : > { %vm1256_vm14 = vmor %vm1254_vm3, %vm1255_vm2 }
 0x907   : > { %v1250_v2 = vmul.f32 %v1644_v8, %v1249_v9 }
 0x909   : > { %v1251_v12 = vmul.f32 0.5, %v1250_v2 }
 0x90b   : > { %v1252_v14 = vsub.f32 1.5, %v1251_v12 }
 0x90c   : > { %v1264_v17 = vpop.permute.xlu0 %1263 }
 0x90d   : > { %v1253_v15 = vmul.f32 %v1644_v8, %v1252_v14 }
 0x90f   : > { %v1257_v13 = vsel %vm1256_vm14, %v1644_v8, %v1253_v15 }
 0x910   : > { %v1258_v10 = vmul.f32 %v1257_v13, %v1241_v55 }
 0x912   : > { %v1262_v18 = vmul.f32 %v1260_v16, %v1258_v10 }
 0x914   : > { %v1266_v19 = vadd.f32 %v1264_v17, %v1262_v18 }
 0x916   : > { %v1267_v20 = vpack.c.bf16 %v1266_v19, %v1266_v19 }
 0x918   : > { %1553 = vmatmul.msk.bf16.vlgmr.msra.gmra.mxu2 %vm297_vm0, %v1267_v20 }
 0x99b   : > { %v1300_v25 = vpop.f32.mrf.mxu2 }
 0x99c   : > { %v1301_v26 = vadd.f32 %v1605_v24, %v1300_v25 }
 0x99e   : > { %v1304_v27 = vmax.f32 %v1301_v26, 0.0 }
 0x9a0   : > { %v1305_v29 = vpack.c.bf16 %v1304_v27, %v1304_v27 }
 0x9a2   : > { %1336 = vmatmul.bf16.vlgmr.msra.gmra.mxu3 %v1305_v29 }
 0x9a3   : > { %v1302_v30 = vpop.f32.mrf.mxu2 }
 0xa25   : > { %v1337_v32 = vpop.f32.mrf.mxu3 }
 0xa26   : > { %v1338_v33 = vadd.f32 %v1337_v32, %v1326_v31 }
 0xa28   : > { %v1341_v34 = vadd.f32 %v1338_v33, %v1266_v19 }
 0xa2a   : > { %v1342_v35 = vsel %vm297_vm0, %v1341_v34, 0.0 }
 0xa2b   : > { %1343 = vadd.xlane.f32.xlu2 %v1342_v35 }
 0xa2d   : > { %v1339_v36 = vpop.f32.mrf.mxu3 }
 0xa9e   : > { %v1344_v37 = vpop.xlane.xlu2 %1343 }
 0xa9f   : > { %v1345_v38 = vmul.f32 %v1344_v37, %v1821_v7 }
 0xaa1   : > { %v1346_v39 = vsub.f32 %v1341_v34, %v1345_v38 }
 0xaa3   : > { %v1347_v40 = vmul.f32 %v1346_v39, %v1346_v39 }
 0xaa5   : > { %v1348_v41 = vsel %vm297_vm0, %v1347_v40, 0.0 }
 0xaa6   : > { %1349 = vadd.xlane.f32.xlu0 %v1348_v41 }
 0xb19   : > { %v1350_v42 = vpop.xlane.xlu0 %1349 }
 0xb1a   : > { %v1351_v43 = vmul.f32 %v1350_v42, %v1821_v7 }
 0xb1c   : > { %v1352_v44 = vadd.f32 1e-05, %v1351_v43 }
 0xb1e   : > { %1645 = vrsqrt.f32 %v1352_v44  ;;  %vm1359_vm1 = vweird.f32 %v1352_v44 }
 0xb24   : > { %v1646_v45 = vpop.eup %1645 }
 0xb25   : > { %v1354_v46 = vmul.f32 %v1646_v45, %v1352_v44  ;;  %vm1360_vm15 = vweird.f32 %v1646_v45 }
 0xb26   : > { %vm1361_vm4 = vmor %vm1359_vm1, %vm1360_vm15 }
 0xb27   : > { %v1355_v47 = vmul.f32 %v1646_v45, %v1354_v46 }
 0xb29   : > { %v1356_v48 = vmul.f32 0.5, %v1355_v47 }
 0xb2b   : > { %v1357_v49 = vsub.f32 1.5, %v1356_v48 }
 0xb2d   : > { %v1358_v50 = vmul.f32 %v1646_v45, %v1357_v49 }
 0xb2f   : > { %v1362_v51 = vsel %vm1361_vm4, %v1646_v45, %v1358_v50 }
 0xb30   : > { %v1363_v52 = vmul.f32 %v1362_v51, %v1346_v39 }
 0xb32   : > { %v1365_v54 = vmul.f32 %v1606_v23, %v1363_v52 }
 0xb34   : > { %v1369_v7 = vadd.f32 %v1367_v53, %v1365_v54 }
 0xb36   : > { %1370 = vst.msk [vmem:[%s270_s24] sm:$0xff] %vm297_vm0, %v1369_v7 }
 0xb37 PF: > { %s16_s18 = sadd.s32 1, %s1687_s18  }
 0xb38   : > { %p13_p7 = scmp.ge.s32.totalorder %s16_s18, 4  }
 0xb3a   :  { %15 = sbr.rel (!%p13_p7) target bundleno = 1 (0x1), region = 81 }
 0xb3f   :  { %1390 = vsyncpa [#allocation3], 1 }
 0xb40   :  { %1392 = vsyncpa [#allocation3 + $0x1], 1 }

</bundles_post_ra>
